<compile_context>
chip_gen: v7x
topology: tpu7x:2x2x1
jax: 0.10.0
libtpu: 0.0.40
codegen_flags: <defaults>
</compile_context>

<pallas_src>
import jax
import jax.numpy as jnp
from jax.experimental import pallas as pl
from jax.experimental.pallas import tpu as pltpu


def _round_up(x, m):
    return (x + m - 1) // m * m


def _sigmoid(v):
    # exp rides the EUP slot; approx reciprocal (vrcp) keeps the divide off
    # the VALU (tightest on v5e, which has no bf16 VPU path).
    return pl.reciprocal(1.0 + jnp.exp(-v), approx=True)


def _ae_kernel(x_ref,
               w1_ref, b1_ref,
               w2_ref, b2_ref,
               w3_ref, b3_ref,
               w4_ref, b4_ref,
               recon_ref, code_ref,
               acc_ref, d_ref):
    """Fused 4-layer sigmoid MLP autoencoder, K/N-streamed over input_size.

    Grid axes: (batch_tile i, phase p, d_chunk k).
      phase 0: acc += x_chunk @ w1_chunk; at last chunk run layers 1-3,
               write `code` and stash decoder-hidden `d` (bf16) in scratch.
      phase 1: recon_chunk = sigmoid(d @ w4_chunk + b4_chunk).
    """
    p = pl.program_id(1)
    k = pl.program_id(2)
    nk = pl.num_programs(2)

    @pl.when(jnp.logical_and(p == 0, k == 0))
    def _init():
        acc_ref[...] = jnp.zeros_like(acc_ref)

    @pl.when(p == 0)
    def _accumulate():
        acc_ref[...] += jnp.dot(x_ref[...], w1_ref[...],
                                preferred_element_type=jnp.float32)

    @pl.when(jnp.logical_and(p == 0, k == nk - 1))
    def _encode():
        h = _sigmoid(acc_ref[...] + b1_ref[...])
        code = _sigmoid(jnp.dot(h.astype(jnp.bfloat16), w2_ref[...],
                                preferred_element_type=jnp.float32) + b2_ref[...])
        d = _sigmoid(jnp.dot(code.astype(jnp.bfloat16), w3_ref[...],
                             preferred_element_type=jnp.float32) + b3_ref[...])
        code_ref[...] = code.astype(code_ref.dtype)
        d_ref[...] = d.astype(jnp.bfloat16)

    @pl.when(p == 1)
    def _decode():
        r = _sigmoid(jnp.dot(d_ref[...], w4_ref[...],
                             preferred_element_type=jnp.float32) + b4_ref[...])
        recon_ref[...] = r.astype(recon_ref.dtype)


def _vmem_budget_bytes():
    """~85% of this generation's VMEM (v5e/v6e 128 MiB, v7x 64 MiB per TC)."""
    try:
        cap = int(pltpu.get_tpu_info().vmem_capacity_bytes)
    except Exception:
        cap = 64 << 20  # conservative (v7x per-TC) fallback
    return int(0.85 * cap)


def _pick_chunk(Dp, Hp, budget):
    """Largest 128-multiple divisor of Dp whose streamed w1/w4 chunk buffers,
    plus resident w2/w3/biases, fit in ~40% of the VMEM budget."""
    m = Dp // 128
    resident = 4 * Hp * Hp + 3 * 8 * Hp * 4        # w2,w3 bf16 + b1..b3 (sublane-padded f32)
    w_budget = int(0.4 * budget)
    ck = 128
    for g in range(1, m + 1):
        if m % g:
            continue
        cand = 128 * g
        stream = 8 * cand * Hp + 8 * cand          # double-buffered w1/w4 chunks + b4 chunks
        if resident + stream <= w_budget:
            ck = cand
    return ck


def _pick_batch_tile(B, Hp, CK, out_bytes, budget):
    """Derive TB from the VMEM budget; multiple of 16, >=128, prefer <=512."""
    # per-row VMEM: x chunks (bf16 x2 bufs), recon chunks (x2), code (x2),
    # acc f32, d bf16, plus slack for in-kernel f32 intermediates.
    per_row = (2 * CK * 2) + (2 * CK * out_bytes) + (2 * Hp * out_bytes) \
              + (Hp * 4) + (Hp * 2) + (16 * Hp)
    fixed = 4 * Hp * Hp + 3 * 8 * Hp * 4 + 8 * CK * Hp + 8 * CK + (2 << 20)
    tb_aff = max(16, (budget - fixed) // per_row)
    tb = min(512, (tb_aff // 16) * 16)
    tb = max(tb, 128)                              # never feed the MXU tiny tiles
    tb = min(tb, max(128, _round_up(B, 16)))       # but don't exceed what B needs
    if B > 256:                                    # v7x: prefer >=2 tiles so "parallel" shards
        tb = min(tb, max(128, _round_up((B + 1) // 2, 16)))
    return tb


def ae_forward(x, params, *, out_dtype=None, batch_tile=None, d_chunk=None):
    """x: (B, input_size) float32. params: (in,out) weights / (1,out) biases."""
    B, D = x.shape
    H = params["w1"].shape[1]
    out_dtype = x.dtype if out_dtype is None else jnp.dtype(out_dtype)
    ob = jnp.dtype(out_dtype).itemsize

    Dp = _round_up(D, 128)
    Hp = _round_up(H, 128)

    budget = _vmem_budget_bytes()
    CK = d_chunk if d_chunk is not None else _pick_chunk(Dp, Hp, budget)
    assert CK % 128 == 0 and Dp % CK == 0, (CK, Dp)
    if batch_tile is not None:
        TB = max(16, _round_up(batch_tile, 16))
    else:
        TB = _pick_batch_tile(B, Hp, CK, ob, budget)

    nb = (B + TB - 1) // TB
    nk = Dp // CK

    f32, bf16 = jnp.float32, jnp.bfloat16

    def pad2(a, r, c, dtype):
        a = a.astype(dtype)
        if a.shape == (r, c):
            return a
        out = jnp.zeros((r, c), dtype)
        return out.at[: a.shape[0], : a.shape[1]].set(a)

    # Zero-pad the contraction/feature dims only (one-time, required so padded
    # columns are inert); cast x to bf16 so the kernel DMAs 2 B/elem.
    # No batch padding: Pallas masks the ragged last batch tile.
    x_p = pad2(x, B, Dp, bf16)
    w1 = pad2(params["w1"], Dp, Hp, bf16); b1 = pad2(params["b1"], 1, Hp, f32)
    w2 = pad2(params["w2"], Hp, Hp, bf16); b2 = pad2(params["b2"], 1, Hp, f32)
    w3 = pad2(params["w3"], Hp, Hp, bf16); b3 = pad2(params["b3"], 1, Hp, f32)
    w4 = pad2(params["w4"], Hp, Dp, bf16); b4 = pad2(params["b4"], 1, Dp, f32)

    def resident(r, c):
        # Block index never changes -> VMEM-resident, single-buffered.
        return pl.BlockSpec((r, c), lambda i, p, k: (0, 0),
                            pipeline_mode=pl.Buffered(1))

    in_specs = [
        pl.BlockSpec((TB, CK), lambda i, p, k: (i, k * (1 - p))),   # x (K-chunked, parked in phase 1)
        pl.BlockSpec((CK, Hp), lambda i, p, k: (k * (1 - p), 0)),   # w1 (K-streamed)
        resident(1, Hp),                                            # b1
        resident(Hp, Hp),                                           # w2
        resident(1, Hp),                                            # b2
        resident(Hp, Hp),                                           # w3
        resident(1, Hp),                                            # b3
        pl.BlockSpec((Hp, CK), lambda i, p, k: (0, k * p)),         # w4 (N-streamed)
        pl.BlockSpec((1, CK), lambda i, p, k: (0, k * p)),          # b4 (N-streamed)
    ]
    out_specs = (
        pl.BlockSpec((TB, CK), lambda i, p, k: (i, k * p)),         # recon chunks
        pl.BlockSpec((TB, Hp), lambda i, p, k: (i, 0)),             # code (resident per batch tile)
    )

    rows = nb * TB
    w_bytes = 2 * (Dp * Hp + 2 * Hp * Hp + Hp * Dp)
    cost = pl.CostEstimate(
        flops=int(2 * rows * (2 * Dp * Hp + 2 * Hp * Hp)),
        transcendentals=int(rows * (3 * Hp + Dp)),
        bytes_accessed=int(w_bytes + 2 * B * Dp + ob * B * (Dp + Hp)),
    )

    recon_p, code_p = pl.pallas_call(
        _ae_kernel,
        out_shape=(
            jax.ShapeDtypeStruct((B, Dp), out_dtype),
            jax.ShapeDtypeStruct((B, Hp), out_dtype),
        ),
        grid=(nb, 2, nk),
        in_specs=in_specs,
        out_specs=out_specs,
        scratch_shapes=[
            pltpu.VMEM((TB, Hp), jnp.float32),    # layer-1 accumulator
            pltpu.VMEM((TB, Hp), jnp.bfloat16),   # decoder-hidden activation
        ],
        compiler_params=pltpu.CompilerParams(
            dimension_semantics=("parallel", "arbitrary", "arbitrary"),
            vmem_limit_bytes=int(budget),
        ),
        cost_estimate=cost,
    )(x_p, w1, b1, w2, b2, w3, b3, w4, b4)

    recon = recon_p if Dp == D else recon_p[:, :D]
    code = code_p if Hp == H else code_p[:, :H]
    return recon, code


def init_params(key, input_size, hidden_size):
    """Deterministic param init. Weights stored as (in, out) = PyTorch W.T."""
    ks = jax.random.split(key, 8)
    scale = 0.05

    def w(k, shape):
        return scale * jax.random.normal(k, shape, dtype=jnp.float32)

    return {
        "w1": w(ks[0], (input_size, hidden_size)),
        "b1": w(ks[1], (1, hidden_size)),
        "w2": w(ks[2], (hidden_size, hidden_size)),
        "b2": w(ks[3], (1, hidden_size)),
        "w3": w(ks[4], (hidden_size, hidden_size)),
        "b3": w(ks[5], (1, hidden_size)),
        "w4": w(ks[6], (hidden_size, input_size)),
        "b4": w(ks[7], (1, input_size)),
    }


def ae_forward_ref(x, p):
    """Pure-JAX f32 reference for correctness checking."""
    h = jax.nn.sigmoid(x @ p["w1"] + p["b1"])
    code = jax.nn.sigmoid(h @ p["w2"] + p["b2"])
    d = jax.nn.sigmoid(code @ p["w3"] + p["b3"])
    recon = jax.nn.sigmoid(d @ p["w4"] + p["b4"])
    return recon, code


if __name__ == "__main__":
    key = jax.random.PRNGKey(0)
    k_x, k_p, k_x2, k_p2 = jax.random.split(key, 4)

    # Config 1: small shapes, single chunk (nk=1), ragged single batch tile.
    batch, input_size, hidden_size = 8, 64, 32
    x = jax.random.normal(k_x, (batch, input_size), dtype=jnp.float32)
    params = init_params(k_p, input_size, hidden_size)

    recon, code = jax.block_until_ready(ae_forward(x, params))
    recon_ref, code_ref = ae_forward_ref(x, params)
    assert recon.shape == (batch, input_size)
    assert code.shape == (batch, hidden_size)
    # bf16 MXU operands (f32 accumulation) + approx reciprocal -> loosened tol.
    assert jnp.allclose(recon, recon_ref, atol=2e-2), float(
        jnp.max(jnp.abs(recon - recon_ref)))
    assert jnp.allclose(code, code_ref, atol=2e-2), float(
        jnp.max(jnp.abs(code - code_ref)))

    # Config 2: force the w1/w4 streaming path (nk > 1) to exercise the
    # K-accumulate / N-chunked-decode structure used for large input_size.
    batch2, input2, hidden2 = 48, 256, 32
    x2 = jax.random.normal(k_x2, (batch2, input2), dtype=jnp.float32)
    params2 = init_params(k_p2, input2, hidden2)

    recon2, code2 = jax.block_until_ready(
        ae_forward(x2, params2, d_chunk=128, batch_tile=128))
    recon2_ref, code2_ref = ae_forward_ref(x2, params2)
    assert recon2.shape == (batch2, input2)
    assert code2.shape == (batch2, hidden2)
    assert jnp.allclose(recon2, recon2_ref, atol=2e-2), float(
        jnp.max(jnp.abs(recon2 - recon2_ref)))
    assert jnp.allclose(code2, code2_ref, atol=2e-2), float(
        jnp.max(jnp.abs(code2 - code2_ref)))

    print("KERNEL_OK")
</pallas_src>

<mosaic_0001>
module attributes {stable_mosaic.version = 11 : i64} {
  func.func @_ae_kernel(%arg0: i32, %arg1: i32, %arg2: i32, %arg3: memref<128x128xbf16, #tpu.memory_space<vmem>>, %arg4: memref<128x128xbf16, #tpu.memory_space<vmem>>, %arg5: memref<1x128xf32, #tpu.memory_space<vmem>>, %arg6: memref<128x128xbf16, #tpu.memory_space<vmem>>, %arg7: memref<1x128xf32, #tpu.memory_space<vmem>>, %arg8: memref<128x128xbf16, #tpu.memory_space<vmem>>, %arg9: memref<1x128xf32, #tpu.memory_space<vmem>>, %arg10: memref<128x128xbf16, #tpu.memory_space<vmem>>, %arg11: memref<1x128xf32, #tpu.memory_space<vmem>>, %arg12: memref<128x128xf32, #tpu.memory_space<vmem>>, %arg13: memref<128x128xf32, #tpu.memory_space<vmem>>, %arg14: memref<128x128xf32, #tpu.memory_space<vmem>>, %arg15: memref<128x128xbf16, #tpu.memory_space<vmem>>) attributes {dimension_semantics = [#tpu.dimension_semantics<parallel>, #tpu.dimension_semantics<arbitrary>, #tpu.dimension_semantics<arbitrary>], iteration_bounds = array<i64: 1, 2, 1>, scalar_prefetch = 0 : i64, scratch_operands = 2 : i64, tpu.core_type = #tpu.core_type<tc>, window_params = [{transform_indices = @transform_0, window_bounds = array<i64: 128, 128>}, {transform_indices = @transform_1, window_bounds = array<i64: 128, 128>}, {pipeline_mode = #tpu.pipeline_mode<synchronous>, transform_indices = @transform_2, window_bounds = array<i64: 1, 128>}, {pipeline_mode = #tpu.pipeline_mode<synchronous>, transform_indices = @transform_3, window_bounds = array<i64: 128, 128>}, {pipeline_mode = #tpu.pipeline_mode<synchronous>, transform_indices = @transform_4, window_bounds = array<i64: 1, 128>}, {pipeline_mode = #tpu.pipeline_mode<synchronous>, transform_indices = @transform_5, window_bounds = array<i64: 128, 128>}, {pipeline_mode = #tpu.pipeline_mode<synchronous>, transform_indices = @transform_6, window_bounds = array<i64: 1, 128>}, {transform_indices = @transform_7, window_bounds = array<i64: 128, 128>}, {transform_indices = @transform_8, window_bounds = array<i64: 1, 128>}, {transform_indices = @transform_9, window_bounds = array<i64: 128, 128>}, {transform_indices = @transform_10, window_bounds = array<i64: 128, 128>}]} {
    %c0_i32 = arith.constant 0 : i32
    %0 = arith.cmpi eq, %arg1, %c0_i32 : i32
    %c0_i32_0 = arith.constant 0 : i32
    %1 = arith.cmpi eq, %arg2, %c0_i32_0 : i32
    %2 = arith.andi %0, %1 : i1
    %3 = arith.extui %2 : i1 to i32
    %c0_i32_1 = arith.constant 0 : i32
    %4 = arith.cmpi ne, %3, %c0_i32_1 : i32
    scf.if %4 {
      %cst = arith.constant 0.000000e+00 : f32
      %16 = vector.broadcast %cst : f32 to vector<128x128xf32>
      %c0 = arith.constant 0 : index
      %c0_8 = arith.constant 0 : index
      %17 = vector.load %arg14[%c0, %c0_8] : memref<128x128xf32, #tpu.memory_space<vmem>>, vector<128x128xf32>
      tpu.vector_store %arg14[%c0, %c0_8], %16 {strides = array<i32>} : memref<128x128xf32, #tpu.memory_space<vmem>>, vector<128x128xf32>,
    } else {
    }
    %c0_i32_2 = arith.constant 0 : i32
    %5 = arith.cmpi eq, %arg1, %c0_i32_2 : i32
    %6 = arith.extui %5 : i1 to i32
    %c0_i32_3 = arith.constant 0 : i32
    %7 = arith.cmpi ne, %6, %c0_i32_3 : i32
    scf.if %7 {
      %c0 = arith.constant 0 : index
      %c0_8 = arith.constant 0 : index
      %16 = vector.load %arg14[%c0, %c0_8] : memref<128x128xf32, #tpu.memory_space<vmem>>, vector<128x128xf32>
      %c0_9 = arith.constant 0 : index
      %c0_10 = arith.constant 0 : index
      %17 = vector.load %arg3[%c0_9, %c0_10] : memref<128x128xbf16, #tpu.memory_space<vmem>>, vector<128x128xbf16>
      %c0_11 = arith.constant 0 : index
      %c0_12 = arith.constant 0 : index
      %18 = vector.load %arg4[%c0_11, %c0_12] : memref<128x128xbf16, #tpu.memory_space<vmem>>, vector<128x128xbf16>
      %cst = arith.constant dense<0.000000e+00> : vector<128x128xf32>
      %19 = tpu.matmul %17, %18, %cst {dimension_numbers = #tpu.dot_dimension_numbers<[1], [0], [0], [1], [0, 0, 1, 1], [], []>} : vector<128x128xbf16>, vector<128x128xbf16>, vector<128x128xf32> -> vector<128x128xf32>
      %20 = arith.addf %16, %19 : vector<128x128xf32>
      %c0_13 = arith.constant 0 : index
      %c0_14 = arith.constant 0 : index
      %21 = vector.load %arg14[%c0_13, %c0_14] : memref<128x128xf32, #tpu.memory_space<vmem>>, vector<128x128xf32>
      tpu.vector_store %arg14[%c0_13, %c0_14], %20 {strides = array<i32>} : memref<128x128xf32, #tpu.memory_space<vmem>>, vector<128x128xf32>,
    } else {
    }
    %c0_i32_4 = arith.constant 0 : i32
    %8 = arith.cmpi eq, %arg1, %c0_i32_4 : i32
    %c0_i32_5 = arith.constant 0 : i32
    %9 = arith.cmpi eq, %arg2, %c0_i32_5 : i32
    %10 = arith.andi %8, %9 : i1
    %11 = arith.extui %10 : i1 to i32
    %c0_i32_6 = arith.constant 0 : i32
    %12 = arith.cmpi ne, %11, %c0_i32_6 : i32
    scf.if %12 {
      %c0 = arith.constant 0 : index
      %c0_8 = arith.constant 0 : index
      %16 = vector.load %arg14[%c0, %c0_8] : memref<128x128xf32, #tpu.memory_space<vmem>>, vector<128x128xf32>
      %c0_9 = arith.constant 0 : index
      %c0_10 = arith.constant 0 : index
      %17 = vector.load %arg5[%c0_9, %c0_10] : memref<1x128xf32, #tpu.memory_space<vmem>>, vector<1x128xf32>
      %18 = vector.broadcast %17 : vector<1x128xf32> to vector<128x128xf32>
      %19 = arith.addf %16, %18 : vector<128x128xf32>
      %cst = arith.constant 0.000000e+00 : f32
      %20 = vector.broadcast %cst : f32 to vector<128x128xf32>
      %21 = arith.subf %20, %19 : vector<128x128xf32>
      %22 = math.exp %21 : vector<128x128xf32>
      %cst_11 = arith.constant 1.000000e+00 : f32
      %23 = vector.broadcast %cst_11 : f32 to vector<128x128xf32>
      %24 = arith.addf %23, %22 : vector<128x128xf32>
      %25 = tpu.reciprocal %24 {approx = true} : vector<128x128xf32> -> vector<128x128xf32>
      %26 = arith.truncf %25 : vector<128x128xf32> to vector<128x128xbf16>
      %c0_12 = arith.constant 0 : index
      %c0_13 = arith.constant 0 : index
      %27 = vector.load %arg6[%c0_12, %c0_13] : memref<128x128xbf16, #tpu.memory_space<vmem>>, vector<128x128xbf16>
      %cst_14 = arith.constant dense<0.000000e+00> : vector<128x128xf32>
      %28 = tpu.matmul %26, %27, %cst_14 {dimension_numbers = #tpu.dot_dimension_numbers<[1], [0], [0], [1], [0, 0, 1, 1], [], []>} : vector<128x128xbf16>, vector<128x128xbf16>, vector<128x128xf32> -> vector<128x128xf32>
      %c0_15 = arith.constant 0 : index
      %c0_16 = arith.constant 0 : index
      %29 = vector.load %arg7[%c0_15, %c0_16] : memref<1x128xf32, #tpu.memory_space<vmem>>, vector<1x128xf32>
      %30 = vector.broadcast %29 : vector<1x128xf32> to vector<128x128xf32>
      %31 = arith.addf %28, %30 : vector<128x128xf32>
      %cst_17 = arith.constant 0.000000e+00 : f32
      %32 = vector.broadcast %cst_17 : f32 to vector<128x128xf32>
      %33 = arith.subf %32, %31 : vector<128x128xf32>
      %34 = math.exp %33 : vector<128x128xf32>
      %cst_18 = arith.constant 1.000000e+00 : f32
      %35 = vector.broadcast %cst_18 : f32 to vector<128x128xf32>
      %36 = arith.addf %35, %34 : vector<128x128xf32>
      %37 = tpu.reciprocal %36 {approx = true} : vector<128x128xf32> -> vector<128x128xf32>
      %38 = arith.truncf %37 : vector<128x128xf32> to vector<128x128xbf16>
      %c0_19 = arith.constant 0 : index
      %c0_20 = arith.constant 0 : index
      %39 = vector.load %arg8[%c0_19, %c0_20] : memref<128x128xbf16, #tpu.memory_space<vmem>>, vector<128x128xbf16>
      %cst_21 = arith.constant dense<0.000000e+00> : vector<128x128xf32>
      %40 = tpu.matmul %38, %39, %cst_21 {dimension_numbers = #tpu.dot_dimension_numbers<[1], [0], [0], [1], [0, 0, 1, 1], [], []>} : vector<128x128xbf16>, vector<128x128xbf16>, vector<128x128xf32> -> vector<128x128xf32>
      %c0_22 = arith.constant 0 : index
      %c0_23 = arith.constant 0 : index
      %41 = vector.load %arg9[%c0_22, %c0_23] : memref<1x128xf32, #tpu.memory_space<vmem>>, vector<1x128xf32>
      %42 = vector.broadcast %41 : vector<1x128xf32> to vector<128x128xf32>
      %43 = arith.addf %40, %42 : vector<128x128xf32>
      %cst_24 = arith.constant 0.000000e+00 : f32
      %44 = vector.broadcast %cst_24 : f32 to vector<128x128xf32>
      %45 = arith.subf %44, %43 : vector<128x128xf32>
      %46 = math.exp %45 : vector<128x128xf32>
      %cst_25 = arith.constant 1.000000e+00 : f32
      %47 = vector.broadcast %cst_25 : f32 to vector<128x128xf32>
      %48 = arith.addf %47, %46 : vector<128x128xf32>
      %49 = tpu.reciprocal %48 {approx = true} : vector<128x128xf32> -> vector<128x128xf32>
      %c0_26 = arith.constant 0 : index
      %c0_27 = arith.constant 0 : index
      %50 = vector.load %arg13[%c0_26, %c0_27] : memref<128x128xf32, #tpu.memory_space<vmem>>, vector<128x128xf32>
      tpu.vector_store %arg13[%c0_26, %c0_27], %37 {strides = array<i32>} : memref<128x128xf32, #tpu.memory_space<vmem>>, vector<128x128xf32>,
      %51 = arith.truncf %49 : vector<128x128xf32> to vector<128x128xbf16>
      %c0_28 = arith.constant 0 : index
      %c0_29 = arith.constant 0 : index
      %52 = vector.load %arg15[%c0_28, %c0_29] : memref<128x128xbf16, #tpu.memory_space<vmem>>, vector<128x128xbf16>
      tpu.vector_store %arg15[%c0_28, %c0_29], %51 {strides = array<i32>} : memref<128x128xbf16, #tpu.memory_space<vmem>>, vector<128x128xbf16>,
    } else {
    }
    %c1_i32 = arith.constant 1 : i32
    %13 = arith.cmpi eq, %arg1, %c1_i32 : i32
    %14 = arith.extui %13 : i1 to i32
    %c0_i32_7 = arith.constant 0 : i32
    %15 = arith.cmpi ne, %14, %c0_i32_7 : i32
    scf.if %15 {
      %c0 = arith.constant 0 : index
      %c0_8 = arith.constant 0 : index
      %16 = vector.load %arg15[%c0, %c0_8] : memref<128x128xbf16, #tpu.memory_space<vmem>>, vector<128x128xbf16>
      %c0_9 = arith.constant 0 : index
      %c0_10 = arith.constant 0 : index
      %17 = vector.load %arg10[%c0_9, %c0_10] : memref<128x128xbf16, #tpu.memory_space<vmem>>, vector<128x128xbf16>
      %cst = arith.constant dense<0.000000e+00> : vector<128x128xf32>
      %18 = tpu.matmul %16, %17, %cst {dimension_numbers = #tpu.dot_dimension_numbers<[1], [0], [0], [1], [0, 0, 1, 1], [], []>} : vector<128x128xbf16>, vector<128x128xbf16>, vector<128x128xf32> -> vector<128x128xf32>
      %c0_11 = arith.constant 0 : index
      %c0_12 = arith.constant 0 : index
      %19 = vector.load %arg11[%c0_11, %c0_12] : memref<1x128xf32, #tpu.memory_space<vmem>>, vector<1x128xf32>
      %20 = vector.broadcast %19 : vector<1x128xf32> to vector<128x128xf32>
      %21 = arith.addf %18, %20 : vector<128x128xf32>
      %cst_13 = arith.constant 0.000000e+00 : f32
      %22 = vector.broadcast %cst_13 : f32 to vector<128x128xf32>
      %23 = arith.subf %22, %21 : vector<128x128xf32>
      %24 = math.exp %23 : vector<128x128xf32>
      %cst_14 = arith.constant 1.000000e+00 : f32
      %25 = vector.broadcast %cst_14 : f32 to vector<128x128xf32>
      %26 = arith.addf %25, %24 : vector<128x128xf32>
      %27 = tpu.reciprocal %26 {approx = true} : vector<128x128xf32> -> vector<128x128xf32>
      %c0_15 = arith.constant 0 : index
      %c0_16 = arith.constant 0 : index
      %28 = vector.load %arg12[%c0_15, %c0_16] : memref<128x128xf32, #tpu.memory_space<vmem>>, vector<128x128xf32>
      tpu.vector_store %arg12[%c0_15, %c0_16], %27 {strides = array<i32>} : memref<128x128xf32, #tpu.memory_space<vmem>>, vector<128x128xf32>,
    } else {
    }
    return
  }
  func.func @transform_0(%arg0: i32, %arg1: i32, %arg2: i32) -> (i32, i32) {
    %c1_i32 = arith.constant 1 : i32
    %0 = arith.subi %c1_i32, %arg1 : i32
    %1 = arith.muli %arg2, %0 : i32
    %c0_i32 = arith.constant 0 : i32
    return %arg0, %1 : i32, i32
  }
  func.func @transform_1(%arg0: i32, %arg1: i32, %arg2: i32) -> (i32, i32) {
    %c1_i32 = arith.constant 1 : i32
    %0 = arith.subi %c1_i32, %arg1 : i32
    %1 = arith.muli %arg2, %0 : i32
    %c0_i32 = arith.constant 0 : i32
    %c0_i32_0 = arith.constant 0 : i32
    return %1, %c0_i32 : i32, i32
  }
  func.func @transform_2(%arg0: i32, %arg1: i32, %arg2: i32) -> (i32, i32) {
    %c0_i32 = arith.constant 0 : i32
    %c0_i32_0 = arith.constant 0 : i32
    %c0_i32_1 = arith.constant 0 : i32
    return %c0_i32, %c0_i32_0 : i32, i32
  }
  func.func @transform_3(%arg0: i32, %arg1: i32, %arg2: i32) -> (i32, i32) {
    %c0_i32 = arith.constant 0 : i32
    %c0_i32_0 = arith.constant 0 : i32
    %c0_i32_1 = arith.constant 0 : i32
    return %c0_i32, %c0_i32_0 : i32, i32
  }
  func.func @transform_4(%arg0: i32, %arg1: i32, %arg2: i32) -> (i32, i32) {
    %c0_i32 = arith.constant 0 : i32
    %c0_i32_0 = arith.constant 0 : i32
    %c0_i32_1 = arith.constant 0 : i32
    return %c0_i32, %c0_i32_0 : i32, i32
  }
  func.func @transform_5(%arg0: i32, %arg1: i32, %arg2: i32) -> (i32, i32) {
    %c0_i32 = arith.constant 0 : i32
    %c0_i32_0 = arith.constant 0 : i32
    %c0_i32_1 = arith.constant 0 : i32
    return %c0_i32, %c0_i32_0 : i32, i32
  }
  func.func @transform_6(%arg0: i32, %arg1: i32, %arg2: i32) -> (i32, i32) {
    %c0_i32 = arith.constant 0 : i32
    %c0_i32_0 = arith.constant 0 : i32
    %c0_i32_1 = arith.constant 0 : i32
    return %c0_i32, %c0_i32_0 : i32, i32
  }
  func.func @transform_7(%arg0: i32, %arg1: i32, %arg2: i32) -> (i32, i32) {
    %0 = arith.muli %arg2, %arg1 : i32
    %c0_i32 = arith.constant 0 : i32
    %c0_i32_0 = arith.constant 0 : i32
    return %c0_i32, %0 : i32, i32
  }
  func.func @transform_8(%arg0: i32, %arg1: i32, %arg2: i32) -> (i32, i32) {
    %0 = arith.muli %arg2, %arg1 : i32
    %c0_i32 = arith.constant 0 : i32
    %c0_i32_0 = arith.constant 0 : i32
    return %c0_i32, %0 : i32, i32
  }
  func.func @transform_9(%arg0: i32, %arg1: i32, %arg2: i32) -> (i32, i32) {
    %0 = arith.muli %arg2, %arg1 : i32
    %c0_i32 = arith.constant 0 : i32
    return %arg0, %0 : i32, i32
  }
  func.func @transform_10(%arg0: i32, %arg1: i32, %arg2: i32) -> (i32, i32) {
    %c0_i32 = arith.constant 0 : i32
    %c0_i32_0 = arith.constant 0 : i32
    return %arg0, %c0_i32 : i32, i32
  }
}

</mosaic_0001>

<bundles_post_ra>
// kernel: tpu_custom_call.1
= control target key start
LH: loop header
LB: loop body
LE: loop exit
PB: predicated region body
PF: predicated region fallthrough
CT: control target
= control target key end

     0   :  { %s3299_s0 = inlined_call_operand.hbm [shape: bf16[8,128], index: 0, kind: input, shape index: {}]   ;;  %s3300_s1 = inlined_call_operand.hbm [shape: bf16[128,128], index: 1, kind: input, shape index: {}]   ;;  %s3301_s2 = inlined_call_operand.vmem [shape: f32[1,128], index: 2, kind: input, shape index: {}]   ;;  %s3302_s3 = inlined_call_operand.hbm [shape: bf16[128,128], index: 3, kind: input, shape index: {}]   ;;  %s3303_s4 = inlined_call_operand.vmem [shape: f32[1,128], index: 4, kind: input, shape index: {}]   ;;  %s3304_s5 = inlined_call_operand.hbm [shape: bf16[128,128], index: 5, kind: input, shape index: {}]   ;;  %s3305_s6 = inlined_call_operand.vmem [shape: f32[1,128], index: 6, kind: input, shape index: {}]   ;;  %s3306_s7 = inlined_call_operand.hbm [shape: bf16[128,128], index: 7, kind: input, shape index: {}]   ;;  %s3307_s8 = inlined_call_operand.vmem [shape: f32[1,128], index: 8, kind: input, shape index: {}]   ;;  %s3308_s9 = inlined_call_operand.hbm [shape: f32[8,128], index: 9, kind: output, shape index: {0}]   ;;  %s3309_s10 = inlined_call_operand.hbm [shape: f32[8,128], index: 10, kind: output, shape index: {1}]  }
   0x1   :  { %3312 = sst [smem:[#allocation23_spill]] %s3299_s0 }
   0x2   :  { %3313 = sst [smem:[#allocation24_spill]] %s3302_s3 }
   0x3   :  { %3314 = sst [smem:[#allocation25_spill]] %s3304_s5 }
   0x4   :  { %16 = vsyncpa [#allocation5], 0 }
   0x5   :  { %18 = vsyncpa [#allocation5 + $0x1], 0 }
   0x6   :  { %19 = vsyncpa [#allocation8], 0 }
   0x7   :  { %21 = vsyncpa [#allocation8 + $0x1], 0 }
   0x8   :  { %22 = vsyncpa [#allocation11], 0 }
   0x9   :  { %23 = vsyncpa [#allocation6], 0 }
   0xa   :  { %25 = vsyncpa [#allocation6 + $0x1], 0 }
   0xb   :  { %26 = vsyncpa [#allocation15], 0  ;;  %s2997_s13 = smov 0   ;;  %s2999_s14 = smov 0  }
   0xc   :  { %s3001_s15 = smov 0  }
   0xd LB: > { %s3013_s16 = sadd.s32 4294967295, %s2922_s15   ;;  %s47_s18 = sadd.s32 1, %s2918_s14  ;;  %s2922_s15 = sphi %s3001_s15, %s32_s15   ;;  %s2918_s14 = sphi %s2999_s14, %s3333_s14   ;;  %s2914_s13 = sphi %s2997_s13, %s3332_s13  }
   0xe   : > { %p2023_p0 = scmp.ge.s32.totalorder %s2922_s15, 1  ;;  %p49_p1 = scmp.ge.s32.totalorder %s47_s18, 2 }
   0xf   : > { %p335_p2 = scmp.lt.s32.totalorder %s2922_s15, 3  ;;  %p3310_p3 = scmp.eq.s32.totalorder %s3013_s16, 0 }
  0x10   : > { %s3335_s18 = smov (%p49_p1, %s47_s18), 0  ;;  %s2924_s20 = smov [#allocation9]  }
  0x11   : > { %p3022_p4 = pnand %p2023_p0, %p335_p2  ;;  %s350_s21 = sshll.u32 %s2924_s20, 4  ;;  %s351_s21 = int_to_ptr.vmem [resolvable:$true] %s350_s21 }
  0x12   : > { %s2925_s23 = smov [#allocation10]   ;;  %s3317_s3 = sld [smem:[#allocation24_spill]] }
  0x13   : > { %s3315_s19 = scalar_select %p3022_p4, 1, 0 }
  0x14   : > { %p2337_p5 = pneg %p3022_p4  ;;  %s366_s24 = sshll.u32 %s2925_s23, 4  ;;  %s3034_s24 = int_to_ptr.vmem [resolvable:$true] %s366_s24 }
  0x16   : > { %p3030_p6 = pnand %p3310_p3, %p2337_p5 }
  0x18   : > { %s2698_s27 = scalar_lea.hbm %s3317_s3, 1024  ;;  %p2700_p8 = pneg %p3030_p6 }
  0x19   : > { %p2699_p7 = scmp.ne.s32.totalorder %s3317_s3, %s2698_s27  ;;  %p2705_p11 = scmp.lt.u32.totalorder %s2698_s27, %s3317_s3 }
  0x1b   : > { %p2701_p9 = pnand %p2700_p8, %p2699_p7 }
  0x1d   : > { %p2702_p10 = pneg %p2701_p9 }
  0x1f   : > { %p2707_p12 = pnand %p2705_p11, %p2702_p10 }
  0x21   : > { %2710 = shalt.err (!%p2707_p12)
}
  0x22   : > { %s2711_s12 = scalar_lea.vmem %s351_s21, 1024  ;;  %p2719_p2 = scmp.lt.s32.totalorder %s351_s21, %s351_s21 }
  0x23   : > { %p2712_p13 = scmp.ne.s32.totalorder %s351_s21, %s2711_s12  ;;  %p2720_p5 = scmp.lt.s32.totalorder %s2711_s12, %s2711_s12 }
  0x25   : > { %p2714_p0 = pnand %p2712_p13, %p2700_p8  ;;  %p2721_p3 = por %p2720_p5, %p2719_p2 }
  0x27   : > { %p2715_p1 = pneg %p2714_p0 }
  0x29   : > { %p2722_p4 = pnand %p2721_p3, %p2715_p1 }
  0x2b   : > { %2725 = shalt.err (!%p2722_p4)
}
  0x2c   : > { %s2926_s20 = smov 64   ;;  %s2927_s23 = smov 4  }
  0x2d   : > { %2340 = dma.hbm_to_vmem [thread:$0]  (!%p3030_p6), %s3317_s3, 1024, %s351_s21, [#allocation8], %s2926_s20, %s2926_s20, %s2927_s23  }
  0x2e   : > { %s3318_s5 = sld [smem:[#allocation25_spill]] }
  0x34   : > { %s2726_s29 = scalar_lea.hbm %s3318_s5, 1024 }
  0x35   : > { %p2727_p7 = scmp.ne.s32.totalorder %s3318_s5, %s2726_s29  ;;  %p2733_p9 = scmp.lt.u32.totalorder %s2726_s29, %s3318_s5 }
  0x37   : > { %p2729_p3 = pnand %p2727_p7, %p2700_p8 }
  0x39   : > { %p2730_p4 = pneg %p2729_p3 }
  0x3b   : > { %p2735_p10 = pnand %p2733_p9, %p2730_p4 }
  0x3d   : > { %2738 = shalt.err (!%p2735_p10)
}
  0x3e   : > { %s2739_s21 = scalar_lea.vmem %s3034_s24, 1024  ;;  %p2747_p0 = scmp.lt.s32.totalorder %s3034_s24, %s3034_s24 }
  0x3f   : > { %p2740_p11 = scmp.ne.s32.totalorder %s3034_s24, %s2739_s21  ;;  %p2748_p1 = scmp.lt.s32.totalorder %s2739_s21, %s2739_s21 }
  0x41   : > { %p2742_p12 = pnand %p2740_p11, %p2700_p8  ;;  %p2749_p2 = por %p2748_p1, %p2747_p0 }
  0x43   : > { %p2743_p13 = pneg %p2742_p12 }
  0x45   : > { %p2750_p5 = pnand %p2749_p2, %p2743_p13 }
  0x47   : > { %2753 = shalt.err (!%p2750_p5)
}
  0x48   : > { %2343 = dma.hbm_to_vmem [thread:$0]  (!%p3030_p6), %s3318_s5, 1024, %s3034_s24, [#allocation11], %s2926_s20, %s2926_s20, %s2927_s23  }
  0x49   : > { %p2026_p7 = scmp.ge.s32.totalorder %s2922_s15, 2 }
  0x4a   : > { %p2027_p8 = scmp.ne.s32.totalorder (!%p2026_p7), %s2922_s15, 0 }
  0x4b   : > { %379 = sbr.rel (%p2026_p7) target bundleno = 158 (0x9e), region = 36 }
  0x52   : > { %382 = sbr.rel (%p2027_p8) target bundleno = 112 (0x70), region = 40  ;;  %s383_s26 = sand.u32 (!%p2027_p8), 1, %s2922_s15  }
  0x53   : > { %s384_s27 = scalar_lea.sflag (!%p2027_p8), [#allocation5], %s383_s26 }
  0x59   : > { %395 = vsyncadd %s384_s27, 960  ;;  %s2928_s28 = smov [#allocation4]   ;;  %s3319_s0 = sld [smem:[#allocation23_spill]] }
  0x5a   : > { %s401_s29 = sshll.u32 %s2928_s28, 4  ;;  %s402_s29 = int_to_ptr.vmem [resolvable:$true] %s401_s29 }
  0x5f   : > { %s2754_s11 = scalar_lea.hbm %s3319_s0, 64 }
  0x60   : > { %p2755_p6 = scmp.ne.s32.totalorder %s3319_s0, %s2754_s11  ;;  %p2758_p3 = scmp.lt.u32.totalorder %s2754_s11, %s3319_s0 }
  0x62   : > { %p2760_p4 = pnand %p2758_p3, %p2755_p6 }
  0x64   : > { %2763 = shalt.err (!%p2760_p4)
}
  0x65   : > { %s2764_s21 = scalar_lea.vmem %s402_s29, 64  ;;  %s2768_s17 = scalar_lea.vmem %s402_s29, 2048 }
  0x66   : > { %p2765_p9 = scmp.ne.s32.totalorder %s402_s29, %s2764_s21  ;;  %p2769_p10 = scmp.lt.s32.totalorder %s402_s29, %s402_s29 }
  0x67   : > { %p2770_p11 = scmp.lt.s32.totalorder %s2768_s17, %s2764_s21 }
  0x69   : > { %p2771_p12 = por %p2770_p11, %p2769_p10 }
  0x6b   : > { %p2772_p13 = pnand %p2771_p12, %p2765_p9 }
  0x6d   : > { %2775 = shalt.err (!%p2772_p13)
}
  0x6e   : > { %s2929_s25 = smov 64   ;;  %s2930_s26 = smov 4  }
  0x6f   : > { %407 = dma.hbm_to_vmem [thread:$0]  %s3319_s0, 64, %s402_s29, %s384_s27, %s2929_s25, %s2929_s25, %s2930_s26  }
  0x70 PF: > { %p2350_p0 = scmp.eq.s32.totalorder %s2922_s15, 0  ;;  %s411_s30 = sand.u32 1, %s2922_s15  }
  0x71   : > { %s2931_s11 = smov [#allocation7]   ;;  %s412_s20 = scalar_lea.sflag [#allocation8], %s411_s30 }
  0x72   : > { %s424_s24 = sshll.u32 %s2931_s11, 4  ;;  %s2776_s21 = scalar_lea.hbm %s3300_s1, 1024  ;;  %s425_s24 = int_to_ptr.vmem [resolvable:$true] %s424_s24 }
  0x73   : > { %p2777_p1 = scmp.ne.s32.totalorder %s3300_s1, %s2776_s21  ;;  %p2782_p8 = scmp.lt.u32.totalorder %s2776_s21, %s3300_s1 }
  0x75   : > { %p2778_p2 = pnand %p2777_p1, %p2350_p0 }
  0x77   : > { %p2779_p5 = pneg %p2778_p2 }
  0x79   : > { %p2784_p6 = pnand %p2782_p8, %p2779_p5 }
  0x7b   : > { %2787 = shalt.err (!%p2784_p6)
}
  0x7c   : > { %s2788_s25 = scalar_lea.vmem %s425_s24, 1024  ;;  %s2794_s26 = scalar_lea.vmem %s425_s24, 2048 }
  0x7d   : > { %p2789_p3 = scmp.ne.s32.totalorder %s425_s24, %s2788_s25  ;;  %p2795_p10 = scmp.lt.s32.totalorder %s425_s24, %s425_s24 }
  0x7e   : > { %p2796_p11 = scmp.lt.s32.totalorder %s2794_s26, %s2788_s25 }
  0x7f   : > { %p2790_p4 = pnand %p2789_p3, %p2350_p0 }
  0x80   : > { %p2797_p12 = por %p2796_p11, %p2795_p10 }
  0x81   : > { %p2791_p9 = pneg %p2790_p4 }
  0x83   : > { %p2798_p13 = pnand %p2797_p12, %p2791_p9 }
  0x85   : > { %2801 = shalt.err (!%p2798_p13)
}
  0x86   : > { %s2932_s3 = smov 64   ;;  %s2933_s28 = smov 4  }
  0x87   : > { %2320 = dma.hbm_to_vmem [thread:$0]  (%p2350_p0), %s3300_s1, 1024, %s425_s24, %s412_s20, %s2932_s3, %s2932_s3, %s2933_s28  }
  0x88   : > { %s2934_s23 = smov [#allocation12]   ;;  %s435_s21 = scalar_lea.sflag [#allocation5], %s411_s30 }
  0x89   : > { %s445_s12 = sshll.u32 %s2934_s23, 4  ;;  %s2802_s29 = scalar_lea.hbm %s3306_s7, 1024  ;;  %s446_s12 = int_to_ptr.vmem [resolvable:$true] %s445_s12 }
  0x8a   : > { %p2803_p1 = scmp.ne.s32.totalorder %s3306_s7, %s2802_s29  ;;  %p2808_p8 = scmp.lt.u32.totalorder %s2802_s29, %s3306_s7 }
  0x8c   : > { %p2804_p2 = pnand %p2803_p1, %p2350_p0 }
  0x8e   : > { %p2805_p5 = pneg %p2804_p2 }
  0x90   : > { %p2810_p6 = pnand %p2808_p8, %p2805_p5 }
  0x92   : > { %2813 = shalt.err (!%p2810_p6)
}
  0x93   : > { %s2814_s24 = scalar_lea.vmem %s446_s12, 1024  ;;  %s2820_s30 = scalar_lea.vmem %s446_s12, 2048 }
  0x94   : > { %p2815_p3 = scmp.ne.s32.totalorder %s446_s12, %s2814_s24  ;;  %p2821_p10 = scmp.lt.s32.totalorder %s446_s12, %s446_s12 }
  0x95   : > { %p2822_p11 = scmp.lt.s32.totalorder %s2820_s30, %s2814_s24 }
  0x96   : > { %p2816_p4 = pnand %p2815_p3, %p2350_p0 }
  0x97   : > { %p2823_p12 = por %p2822_p11, %p2821_p10 }
  0x98   : > { %p2817_p9 = pneg %p2816_p4 }
  0x9a   : > { %p2824_p13 = pnand %p2823_p12, %p2817_p9 }
  0x9c   : > { %2827 = shalt.err (!%p2824_p13)
}
  0x9d   : > { %2322 = dma.hbm_to_vmem [thread:$0]  (%p2350_p0), %s3306_s7, 1024, %s446_s12, %s435_s21, %s2932_s3, %s2932_s3, %s2933_s28  }
  0x9e PF: > { %p3320_p1 = scmp.ne.s32.totalorder %s3315_s19, 0 }
  0x9f   : > { %s467_s0 = sand.u32 (!%p3320_p1), 1, %s3013_s16   ;;  %p3321_p2 = scmp.eq.s32.totalorder (!%p3320_p1), %s3013_s16, 0 }
  0xa0   : > { %465 = sbr.rel (%p3320_p1) target bundleno = 1372 (0x55c), region = 56  ;;  %s468_s5 = scalar_lea.sflag (!%p3320_p1), [#allocation5], %s467_s0 }
  0xa7   : > { %2885 = dma.done.wait (%p3321_p2), %s468_s5, 1024   ;;  %p3322_p5 = pmov %p3321_p2 }
  0xa8   : > { %s477_s11 = scalar_lea.sflag [#allocation8], %s467_s0  ;;  %p3323_p8 = pmov %p3321_p2 }
  0xa9   : > { %2887 = vsyncadd (%p3322_p5), %s468_s5, 4294966272 }
  0xaa   : > { %2889 = dma.done.wait (%p3323_p8), %s477_s11, 1024   ;;  %p3324_p6 = pmov %p3321_p2 }
  0xab   : > { %p3325_p0 = pmov %p3321_p2 }
  0xac   : > { %2891 = vsyncadd (%p3324_p6), %s477_s11, 4294966272 }
  0xad   : > { %2893 = dma.done.wait (%p3325_p0), [#allocation8], 1024   ;;  %p3326_p3 = pmov %p3325_p0 }
  0xae   : > { %p3327_p4 = pmov %p3325_p0 }
  0xaf   : > { %2895 = vsyncadd (%p3326_p3), [#allocation8], 4294966272 }
  0xb0   : > { %2897 = dma.done.wait (%p3327_p4), [#allocation11], 1024   ;;  %p3328_p9 = pmov %p3325_p0 }
  0xb1   : > { %p3329_p10 = pmov %p3325_p0 }
  0xb2   : > { %2899 = vsyncadd (%p3328_p9), [#allocation11], 4294966272 }
  0xb3   : > { %2901 = dma.done.wait (%p3329_p10), %s468_s5, 1024   ;;  %p3330_p11 = pmov %p3325_p0 }
  0xb4   : > { %p570_p12 = scmp.eq.s32.totalorder %s2914_s13, 0 }
  0xb5   : > { %2903 = vsyncadd (%p3330_p11), %s468_s5, 4294966272  ;;  %v2935_v0 = vmov (%p570_p12), 0.0  }
  0xb6   : > { %575 = sbr.rel (!%p570_p12) target bundleno = 190 (0xbe), region = 80  ;;  %576 = vst [vmem:[#allocation2] sm:$0xff] (%p570_p12), %v2935_v0  ;;  %577 = vst [vmem:[#allocation2 + $0x8] sm:$0xff] (%p570_p12), %v2935_v0 }
  0xb7   : > { %578 = vst [vmem:[#allocation2 + $0x10] sm:$0xff] (%p570_p12), %v2935_v0  ;;  %579 = vst [vmem:[#allocation2 + $0x18] sm:$0xff] (%p570_p12), %v2935_v0 }
  0xb8   : > { %580 = vst [vmem:[#allocation2 + $0x20] sm:$0xff] (%p570_p12), %v2935_v0  ;;  %581 = vst [vmem:[#allocation2 + $0x28] sm:$0xff] (%p570_p12), %v2935_v0 }
  0xb9   : > { %582 = vst [vmem:[#allocation2 + $0x30] sm:$0xff] (%p570_p12), %v2935_v0  ;;  %583 = vst [vmem:[#allocation2 + $0x38] sm:$0xff] (%p570_p12), %v2935_v0 }
  0xba   : > { %584 = vst [vmem:[#allocation2 + $0x40] sm:$0xff] (%p570_p12), %v2935_v0  ;;  %585 = vst [vmem:[#allocation2 + $0x48] sm:$0xff] (%p570_p12), %v2935_v0 }
  0xbb   : > { %586 = vst [vmem:[#allocation2 + $0x50] sm:$0xff] (%p570_p12), %v2935_v0  ;;  %587 = vst [vmem:[#allocation2 + $0x58] sm:$0xff] (%p570_p12), %v2935_v0 }
  0xbc   : > { %588 = vst [vmem:[#allocation2 + $0x60] sm:$0xff] (%p570_p12), %v2935_v0  ;;  %589 = vst [vmem:[#allocation2 + $0x68] sm:$0xff] (%p570_p12), %v2935_v0 }
  0xbd   : > { %590 = vst [vmem:[#allocation2 + $0x70] sm:$0xff] %v2935_v0  ;;  %591 = vst [vmem:[#allocation2 + $0x78] sm:$0xff] %v2935_v0 }
  0xbe PF: > { %p2038_p13 = scmp.ne.s32.totalorder %s2914_s13, 0 }
  0xbf   : > { %v2402_v1 = vld [vmem:[#allocation7] sm:$0xff] (!%p2038_p13)   ;;  %v2403_v2 = vld [vmem:[#allocation7 + $0x8] sm:$0xff] (!%p2038_p13)   ;;  %v2404_v3 = vld [vmem:[#allocation7 + $0x10] sm:$0xff] (!%p2038_p13)  }
  0xc0   : > { %594 = sbr.rel (%p2038_p13) target bundleno = 450 (0x1c2), region = 84  ;;  %2155 = vmatprep.subr.bf16.mxu0 (!%p2038_p13), %v2402_v1  ;;  %2283 = vmatprep.subr.bf16.mxu1 (!%p2038_p13), %v2402_v1  ;;  %v2405_v4 = vld [vmem:[#allocation7 + $0x18] sm:$0xff] (!%p2038_p13)   ;;  %v2410_v5 = vld [vmem:[#allocation4] sm:$0xff] (!%p2038_p13)   ;;  %v2407_v8 = vld [vmem:[#allocation7 + $0x28] sm:$0xff] (!%p2038_p13)  }
  0xc1   : > { %2156 = vmatpush3.bf16.msra.mxu0 (!%p2038_p13), %v2402_v1  ;;  %2291 = vmatpush3.bf16.msra.mxu1 (!%p2038_p13), %v2402_v1  ;;  %v2411_v6 = vld [vmem:[#allocation4 + $0x20] sm:$0xff] (!%p2038_p13)   ;;  %v2408_v9 = vld [vmem:[#allocation7 + $0x30] sm:$0xff] (!%p2038_p13)   ;;  %v2409_v10 = vld [vmem:[#allocation7 + $0x38] sm:$0xff] (!%p2038_p13)  }
  0xc2   : > { %2157 = vmatprep.subr.bf16.mxu0 (!%p2038_p13), %v2403_v2  ;;  %2284 = vmatprep.subr.bf16.mxu1 (!%p2038_p13), %v2403_v2  ;;  %v2406_v7 = vld [vmem:[#allocation7 + $0x20] sm:$0xff] (!%p2038_p13)   ;;  %v2412_v11 = vld [vmem:[#allocation4 + $0x8] sm:$0xff] (!%p2038_p13)   ;;  %v2414_v13 = vld [vmem:[#allocation4 + $0x10] sm:$0xff] (!%p2038_p13)  }
  0xc3   : > { %2171 = vmatprep.mubr.bf16.mxu0 (!%p2038_p13), %v2410_v5  ;;  %2179 = vmatprep.mubr.bf16.mxu1 (!%p2038_p13), %v2411_v6  ;;  %v2413_v12 = vld [vmem:[#allocation4 + $0x28] sm:$0xff] (!%p2038_p13)   ;;  %v2415_v14 = vld [vmem:[#allocation4 + $0x30] sm:$0xff] (!%p2038_p13)   ;;  %v2416_v15 = vld [vmem:[#allocation4 + $0x18] sm:$0xff] (!%p2038_p13)  }
  0xc4   : > { %v2417_v16 = vld [vmem:[#allocation4 + $0x38] sm:$0xff] (!%p2038_p13)   ;;  %v597_v17 = vld [vmem:[#allocation2 + $0x10] sm:$0xff] (!%p2038_p13)  ;;  %v595_v19 = vld [vmem:[#allocation2] sm:$0xff] (!%p2038_p13) }
  0xc5   : > { %2158 = vmatpush3.bf16.msra.mxu0 (!%p2038_p13), %v2403_v2  ;;  %2292 = vmatpush3.bf16.msra.mxu1 (!%p2038_p13), %v2403_v2  ;;  %v605_v18 = vld [vmem:[#allocation2 + $0x50] sm:$0xff] (!%p2038_p13)  ;;  %v603_v20 = vld [vmem:[#allocation2 + $0x40] sm:$0xff] (!%p2038_p13)  ;;  %v598_v23 = vld [vmem:[#allocation2 + $0x18] sm:$0xff] (!%p2038_p13) }
  0xc6   : > { %2159 = vmatprep.subr.bf16.mxu0 (!%p2038_p13), %v2404_v3  ;;  %2285 = vmatprep.subr.bf16.mxu1 (!%p2038_p13), %v2404_v3  ;;  %v606_v24 = vld [vmem:[#allocation2 + $0x58] sm:$0xff] (!%p2038_p13)  ;;  %v596_v29 = vld [vmem:[#allocation2 + $0x8] sm:$0xff] (!%p2038_p13)  ;;  %v601_v41 = vld [vmem:[#allocation2 + $0x30] sm:$0xff] (!%p2038_p13) }
  0xc7   : > { %v604_v30 = vld [vmem:[#allocation2 + $0x48] sm:$0xff]  ;;  %v609_v42 = vld [vmem:[#allocation2 + $0x70] sm:$0xff]  ;;  %v599_v43 = vld [vmem:[#allocation2 + $0x20] sm:$0xff] }
  0xc8   : > { %v607_v44 = vld [vmem:[#allocation2 + $0x60] sm:$0xff]  ;;  %v602_v47 = vld [vmem:[#allocation2 + $0x38] sm:$0xff]  ;;  %v600_v53 = vld [vmem:[#allocation2 + $0x28] sm:$0xff] }
  0xc9   : > { %2160 = vmatpush3.bf16.msra.mxu0 %v2404_v3  ;;  %2293 = vmatpush3.bf16.msra.mxu1 %v2404_v3  ;;  %v610_v48 = vld [vmem:[#allocation2 + $0x78] sm:$0xff]  ;;  %v608_v54 = vld [vmem:[#allocation2 + $0x68] sm:$0xff] }
  0xca   : > { %2161 = vmatprep.subr.bf16.mxu0 %v2405_v4  ;;  %2286 = vmatprep.subr.bf16.mxu1 %v2405_v4 }
  0xcd   : > { %2162 = vmatpush3.bf16.msra.mxu0 %v2405_v4  ;;  %2294 = vmatpush3.bf16.msra.mxu1 %v2405_v4 }
  0xce   : > { %2163 = vmatprep.subr.bf16.mxu0 %v2406_v7  ;;  %2287 = vmatprep.subr.bf16.mxu1 %v2406_v7 }
  0xd1   : > { %2164 = vmatpush3.bf16.msra.mxu0 %v2406_v7  ;;  %2295 = vmatpush3.bf16.msra.mxu1 %v2406_v7 }
  0xd2   : > { %2165 = vmatprep.subr.bf16.mxu0 %v2407_v8  ;;  %2288 = vmatprep.subr.bf16.mxu1 %v2407_v8 }
  0xd5   : > { %2166 = vmatpush3.bf16.msra.mxu0 %v2407_v8  ;;  %2296 = vmatpush3.bf16.msra.mxu1 %v2407_v8 }
  0xd6   : > { %2167 = vmatprep.subr.bf16.mxu0 %v2408_v9  ;;  %2289 = vmatprep.subr.bf16.mxu1 %v2408_v9 }
  0xd9   : > { %2168 = vmatpush3.bf16.msra.mxu0 %v2408_v9  ;;  %2297 = vmatpush3.bf16.msra.mxu1 %v2408_v9 }
  0xda   : > { %2169 = vmatprep.subr.bf16.mxu0 %v2409_v10  ;;  %2290 = vmatprep.subr.bf16.mxu1 %v2409_v10 }
  0xdd   : > { %2170 = vmatpush3.bf16.msra.mxu0 %v2409_v10  ;;  %2298 = vmatpush3.bf16.msra.mxu1 %v2409_v10 }
  0xe0   : > { %2172 = vmatmul.mubr.bf16.vlgmr.msra.gmra.mrb[0].mxu0 %v2412_v11  ;;  %2180 = vmatmul.mubr.bf16.vlgmr.msra.gmra.mrb[0].mxu1 %v2413_v12 }
  0xe1   : > { %2175 = vmatprep.mubr.bf16.mxu0 %v2414_v13  ;;  %2183 = vmatprep.mubr.bf16.mxu1 %v2415_v14 }
  0xe8   : > { %2176 = vmatmul.mubr.bf16.gmra.mrb[4].mxu0 %v2416_v15  ;;  %2184 = vmatmul.mubr.bf16.gmra.mrb[4].mxu1 %v2417_v16 }
 0x1b3   : > { %v2173_v21 = vpop.f32.mrb[0].mxu0  ;;  %v2181_v22 = vpop.f32.mrb[0].mxu1 }
 0x1b4   : > { %v838_v25 = vadd.f32 %v2173_v21, %v597_v17  ;;  %v846_v26 = vadd.f32 %v2181_v22, %v605_v18  ;;  %v773_v27 = vpop.f32.mrb[1].mxu0  ;;  %v805_v28 = vpop.f32.mrb[1].mxu1 }
 0x1b5   : > { %v836_v31 = vadd.f32 %v773_v27, %v595_v19  ;;  %v844_v32 = vadd.f32 %v805_v28, %v603_v20  ;;  %v2174_v33 = vpop.f32.mrb[2].mxu0  ;;  %v2182_v34 = vpop.f32.mrb[2].mxu1 }
 0x1b6   : > { %854 = vst [vmem:[#allocation2 + $0x10] sm:$0xff] %v838_v25  ;;  %862 = vst [vmem:[#allocation2 + $0x50] sm:$0xff] %v846_v26  ;;  %v839_v35 = vadd.f32 %v2174_v33, %v598_v23  ;;  %v847_v36 = vadd.f32 %v2182_v34, %v606_v24  ;;  %v776_v37 = vpop.f32.mrb[3].mxu0  ;;  %v808_v38 = vpop.f32.mrb[3].mxu1 }
 0x1b7   : > { %852 = vst [vmem:[#allocation2] sm:$0xff] %v836_v31  ;;  %860 = vst [vmem:[#allocation2 + $0x40] sm:$0xff] %v844_v32  ;;  %v837_v39 = vadd.f32 %v776_v37, %v596_v29  ;;  %v845_v40 = vadd.f32 %v808_v38, %v604_v30 }
 0x1b8   : > { %855 = vst [vmem:[#allocation2 + $0x18] sm:$0xff] %v839_v35  ;;  %863 = vst [vmem:[#allocation2 + $0x58] sm:$0xff] %v847_v36 }
 0x1b9   : > { %853 = vst [vmem:[#allocation2 + $0x8] sm:$0xff] %v837_v39  ;;  %861 = vst [vmem:[#allocation2 + $0x48] sm:$0xff] %v845_v40 }
 0x1bb   : > { %v2177_v45 = vpop.f32.mrb[4].mxu0  ;;  %v2185_v46 = vpop.f32.mrb[4].mxu1 }
 0x1bc   : > { %v842_v49 = vadd.f32 %v2177_v45, %v601_v41  ;;  %v850_v50 = vadd.f32 %v2185_v46, %v609_v42  ;;  %v789_v51 = vpop.f32.mrb[5].mxu0  ;;  %v821_v52 = vpop.f32.mrb[5].mxu1 }
 0x1bd   : > { %v840_v55 = vadd.f32 %v789_v51, %v599_v43  ;;  %v848_v56 = vadd.f32 %v821_v52, %v607_v44  ;;  %v2178_v57 = vpop.f32.mrb[6].mxu0  ;;  %v2186_v58 = vpop.f32.mrb[6].mxu1 }
 0x1be   : > { %858 = vst [vmem:[#allocation2 + $0x30] sm:$0xff] %v842_v49  ;;  %866 = vst [vmem:[#allocation2 + $0x70] sm:$0xff] %v850_v50  ;;  %v843_v59 = vadd.f32 %v2178_v57, %v602_v47  ;;  %v851_v60 = vadd.f32 %v2186_v58, %v610_v48  ;;  %v792_v61 = vpop.f32.mrb[7].mxu0  ;;  %v824_v62 = vpop.f32.mrb[7].mxu1 }
 0x1bf   : > { %856 = vst [vmem:[#allocation2 + $0x20] sm:$0xff] %v840_v55  ;;  %864 = vst [vmem:[#allocation2 + $0x60] sm:$0xff] %v848_v56  ;;  %v841_v63 = vadd.f32 %v792_v61, %v600_v53  ;;  %v849_v0 = vadd.f32 %v824_v62, %v608_v54 }
 0x1c0   : > { %859 = vst [vmem:[#allocation2 + $0x38] sm:$0xff] %v843_v59  ;;  %867 = vst [vmem:[#allocation2 + $0x78] sm:$0xff] %v851_v60 }
 0x1c1   : > { %857 = vst [vmem:[#allocation2 + $0x28] sm:$0xff] %v841_v63  ;;  %865 = vst [vmem:[#allocation2 + $0x68] sm:$0xff] %v849_v0 }
 0x1c2 PF: > { %869 = sbr.rel (!%p570_p12) target bundleno = 1009 (0x3f1), region = 88  ;;  %v2418_v1 = vld [vmem:[#allocation9] sm:$0xff] (%p570_p12)   ;;  %v2419_v2 = vld [vmem:[#allocation9 + $0x8] sm:$0xff] (%p570_p12)   ;;  %v2420_v3 = vld [vmem:[#allocation9 + $0x10] sm:$0xff] (%p570_p12)  }
 0x1c3   : > { %2187 = vmatprep.subr.bf16.mxu0 (%p570_p12), %v2418_v1  ;;  %v2421_v4 = vld [vmem:[#allocation9 + $0x18] sm:$0xff] (%p570_p12)   ;;  %v870_v5 = vld [vmem:[#allocation2] sm:$0xff] (%p570_p12)  ;;  %v871_v6 = vld [vmem:[#allocation2 + $0x8] sm:$0xff] (%p570_p12) }
 0x1c4   : > { %2188 = vmatpush3.bf16.msra.mxu0 (%p570_p12), %v2418_v1  ;;  %v3174_v7 = vld [vmem:[%s3301_s2] ss:$0 sm:$0xff] (%p570_p12)  ;;  %v872_v10 = vld [vmem:[#allocation2 + $0x10] sm:$0xff] (%p570_p12)  ;;  %v873_v11 = vld [vmem:[#allocation2 + $0x18] sm:$0xff] (%p570_p12) }
 0x1c5   : > { %2189 = vmatprep.subr.bf16.mxu0 (%p570_p12), %v2419_v2  ;;  %v893_v8 = vadd.f32 (%p570_p12), %v3174_v7, %v870_v5  ;;  %v894_v9 = vadd.f32 (%p570_p12), %v3174_v7, %v871_v6  ;;  %v895_v13 = vadd.f32 (%p570_p12), %v3174_v7, %v872_v10  ;;  %v896_v14 = vadd.f32 (%p570_p12), %v3174_v7, %v873_v11  ;;  %v876_v17 = vld [vmem:[#allocation2 + $0x30] sm:$0xff] (%p570_p12)  ;;  %v2422_v19 = vld [vmem:[#allocation9 + $0x20] sm:$0xff] (%p570_p12)   ;;  %v879_v25 = vld [vmem:[#allocation2 + $0x48] sm:$0xff] (%p570_p12) }
 0x1c6   : > { %v874_v12 = vld [vmem:[#allocation2 + $0x20] sm:$0xff] (%p570_p12)  ;;  %v899_v23 = vadd.f32 (%p570_p12), %v3174_v7, %v876_v17  ;;  %v880_v30 = vld [vmem:[#allocation2 + $0x50] sm:$0xff] (%p570_p12)  ;;  %v881_v31 = vld [vmem:[#allocation2 + $0x58] sm:$0xff] (%p570_p12)  ;;  %v902_v45 = vadd.f32 (%p570_p12), %v3174_v7, %v879_v25 }
 0x1c7   : > { %v897_v16 = vadd.f32 (%p570_p12), %v3174_v7, %v874_v12  ;;  %v877_v18 = vld [vmem:[#allocation2 + $0x38] sm:$0xff] (%p570_p12)  ;;  %v909_v20 = vsub.f32 (%p570_p12), 0.0, %v893_v8  ;;  %v910_v21 = vsub.f32 (%p570_p12), 0.0, %v894_v9  ;;  %v878_v24 = vld [vmem:[#allocation2 + $0x40] sm:$0xff] (%p570_p12)  ;;  %v911_v26 = vsub.f32 (%p570_p12), 0.0, %v895_v13  ;;  %v2423_v44 = vld [vmem:[#allocation9 + $0x28] sm:$0xff] (%p570_p12)  }
 0x1c8   : > { %2190 = vmatpush3.bf16.msra.mxu0 (%p570_p12), %v2419_v2  ;;  %v875_v15 = vld [vmem:[#allocation2 + $0x28] sm:$0xff] (%p570_p12)  ;;  %v912_v27 = vsub.f32 (%p570_p12), 0.0, %v896_v14  ;;  %v900_v29 = vadd.f32 (%p570_p12), %v3174_v7, %v877_v18  ;;  %v882_v32 = vld [vmem:[#allocation2 + $0x60] sm:$0xff] (%p570_p12)  ;;  %v915_v36 = vsub.f32 (%p570_p12), 0.0, %v899_v23  ;;  %v901_v40 = vadd.f32 (%p570_p12), %v3174_v7, %v878_v24  ;;  %v2424_v56 = vld [vmem:[#allocation9 + $0x30] sm:$0xff] (%p570_p12)  }
 0x1c9   : > { %2191 = vmatprep.subr.bf16.mxu0 %v2420_v3  ;;  %v898_v22 = vadd.f32 %v3174_v7, %v875_v15  ;;  %v913_v28 = vsub.f32 0.0, %v897_v16  ;;  %v925_v33 = vmul.f32 1.442695, %v909_v20  ;;  %v927_v34 = vmul.f32 1.442695, %v910_v21  ;;  %v2425_v61 = vld [vmem:[#allocation9 + $0x38] sm:$0xff]  }
 0x1ca   : > { %v929_v37 = vmul.f32 1.442695, %v911_v26  ;;  %v931_v38 = vmul.f32 1.442695, %v912_v27  ;;  %v916_v42 = vsub.f32 0.0, %v900_v29  ;;  %v917_v46 = vsub.f32 0.0, %v901_v40 }
 0x1cb   : > { %v914_v35 = vsub.f32 0.0, %v898_v22  ;;  %v933_v39 = vmul.f32 1.442695, %v913_v28  ;;  %2434 = vpow2.f32 %v925_v33  ;;  %v937_v43 = vmul.f32 1.442695, %v915_v36  ;;  %v883_v62 = vld [vmem:[#allocation2 + $0x68] sm:$0xff] }
 0x1cc   : > { %2192 = vmatpush3.bf16.msra.mxu0 %v2420_v3  ;;  %2436 = vpow2.f32 %v927_v34  ;;  %v903_v47 = vadd.f32 %v3174_v7, %v880_v30  ;;  %v939_v48 = vmul.f32 1.442695, %v916_v42  ;;  %v904_v49 = vadd.f32 %v3174_v7, %v881_v31  ;;  %v885_v9 = vld [vmem:[#allocation2 + $0x78] sm:$0xff] }
 0x1cd   : > { %2193 = vmatprep.subr.bf16.mxu0 %v2421_v4  ;;  %v935_v41 = vmul.f32 1.442695, %v914_v35  ;;  %2438 = vpow2.f32 %v929_v37  ;;  %v905_v50 = vadd.f32 %v3174_v7, %v882_v32  ;;  %v918_v51 = vsub.f32 0.0, %v902_v45 }
 0x1ce   : > { %2440 = vpow2.f32 %v931_v38  ;;  %v941_v52 = vmul.f32 1.442695, %v917_v46  ;;  %v919_v53 = vsub.f32 0.0, %v903_v47  ;;  %v920_v54 = vsub.f32 0.0, %v904_v49 }
 0x1cf   : > { %2442 = vpow2.f32 %v933_v39  ;;  %v921_v55 = vsub.f32 0.0, %v905_v50  ;;  %v943_v57 = vmul.f32 1.442695, %v918_v51  ;;  %v906_v8 = vadd.f32 %v3174_v7, %v883_v62 }
 0x1d0   : > { %2194 = vmatpush3.bf16.msra.mxu0 %v2421_v4  ;;  %2444 = vpow2.f32 %v935_v41  ;;  %v945_v58 = vmul.f32 1.442695, %v919_v53  ;;  %v947_v59 = vmul.f32 1.442695, %v920_v54  ;;  %v884_v4 = vld [vmem:[#allocation2 + $0x70] sm:$0xff]  ;;  %v908_v17 = vadd.f32 %v3174_v7, %v885_v9 }
 0x1d1   : > { %2195 = vmatprep.subr.bf16.mxu0 %v2422_v19  ;;  %2446 = vpow2.f32 %v937_v43  ;;  %v949_v60 = vmul.f32 1.442695, %v921_v55  ;;  %v907_v14 = vadd.f32 %v3174_v7, %v884_v4  ;;  %v922_v20 = vsub.f32 0.0, %v906_v8  ;;  %v2428_v4 = vld [vmem:[#allocation10 + $0x10] sm:$0xff]   ;;  %v2431_v8 = vld [vmem:[#allocation10 + $0x28] sm:$0xff]  }
 0x1d2   : > { %2448 = vpow2.f32 %v939_v48  ;;  %v924_v28 = vsub.f32 0.0, %v908_v17  ;;  %v2432_v9 = vld [vmem:[#allocation10 + $0x30] sm:$0xff]  }
 0x1d3   : > { %2450 = vpow2.f32 %v941_v52  ;;  %v923_v25 = vsub.f32 0.0, %v907_v14  ;;  %v951_v31 = vmul.f32 1.442695, %v922_v20 }
 0x1d4   : > { %2196 = vmatpush3.bf16.msra.mxu0 %v2422_v19  ;;  %2452 = vpow2.f32 %v943_v57  ;;  %v955_v36 = vmul.f32 1.442695, %v924_v28 }
 0x1d5   : > { %2197 = vmatprep.subr.bf16.mxu0 %v2423_v44  ;;  %v2435_v63 = vpop.eup %2434  ;;  %2454 = vpow2.f32 %v945_v58  ;;  %v953_v34 = vmul.f32 1.442695, %v923_v25 }
 0x1d6   : > { %v2437_v0 = vpop.eup %2436  ;;  %v957_v1 = vadd.f32 1.0, %v2435_v63  ;;  %2456 = vpow2.f32 %v947_v59 }
 0x1d7   : > { %v2439_v2 = vpop.eup %2438  ;;  %v958_v3 = vadd.f32 1.0, %v2437_v0  ;;  %2458 = vpow2.f32 %v949_v60 }
 0x1d8   : > { %2198 = vmatpush3.bf16.msra.mxu0 %v2423_v44  ;;  %v2441_v5 = vpop.eup %2440  ;;  %2460 = vrcp.f32 %v957_v1  ;;  %v959_v6 = vadd.f32 1.0, %v2439_v2  ;;  %v2426_v2 = vld [vmem:[#allocation10] sm:$0xff]  }
 0x1d9   : > { %2199 = vmatprep.subr.bf16.mxu0 %v2424_v56  ;;  %v2443_v10 = vpop.eup %2442  ;;  %2462 = vrcp.f32 %v958_v3  ;;  %v960_v11 = vadd.f32 1.0, %v2441_v5  ;;  %2219 = vmatprep.subr.bf16.mxu1 %v2426_v2  ;;  %v2427_v3 = vld [vmem:[#allocation10 + $0x8] sm:$0xff]   ;;  %v2429_v5 = vld [vmem:[#allocation10 + $0x18] sm:$0xff]  }
 0x1da   : > { %v2445_v12 = vpop.eup %2444  ;;  %2464 = vrcp.f32 %v959_v6  ;;  %v961_v13 = vadd.f32 1.0, %v2443_v10  ;;  %2220 = vmatpush3.bf16.msra.mxu1 %v2426_v2  ;;  %v2430_v6 = vld [vmem:[#allocation10 + $0x20] sm:$0xff]   ;;  %v2433_v10 = vld [vmem:[#allocation10 + $0x38] sm:$0xff]  }
 0x1db   : > { %v2447_v15 = vpop.eup %2446  ;;  %2466 = vrcp.f32 %v960_v11  ;;  %v962_v16 = vadd.f32 1.0, %v2445_v12  ;;  %2221 = vmatprep.subr.bf16.mxu1 %v2427_v3  ;;  %v3195_v11 = vld [vmem:[%s3303_s4] ss:$0 sm:$0xff] }
 0x1dc   : > { %2200 = vmatpush3.bf16.msra.mxu0 %v2424_v56  ;;  %v2449_v18 = vpop.eup %2448  ;;  %2468 = vrcp.f32 %v961_v13  ;;  %v963_v19 = vadd.f32 1.0, %v2447_v15 }
 0x1dd   : > { %2201 = vmatprep.subr.bf16.mxu0 %v2425_v61  ;;  %v2451_v21 = vpop.eup %2450  ;;  %2470 = vrcp.f32 %v962_v16  ;;  %v964_v22 = vadd.f32 1.0, %v2449_v18 }
 0x1de   : > { %v2453_v23 = vpop.eup %2452  ;;  %2472 = vrcp.f32 %v963_v19  ;;  %v965_v24 = vadd.f32 1.0, %v2451_v21  ;;  %2222 = vmatpush3.bf16.msra.mxu1 %v2427_v3 }
 0x1df   : > { %v2455_v26 = vpop.eup %2454  ;;  %2474 = vrcp.f32 %v964_v22  ;;  %v966_v27 = vadd.f32 1.0, %v2453_v23  ;;  %2223 = vmatprep.subr.bf16.mxu1 %v2428_v4 }
 0x1e0   : > { %2202 = vmatpush3.bf16.msra.mxu0 %v2425_v61  ;;  %v2457_v29 = vpop.eup %2456  ;;  %2476 = vrcp.f32 %v965_v24  ;;  %v967_v30 = vadd.f32 1.0, %v2455_v26 }
 0x1e1   : > { %v2459_v7 = vpop.eup %2458  ;;  %2478 = vrcp.f32 %v966_v27  ;;  %v968_v32 = vadd.f32 1.0, %v2457_v29 }
 0x1e2   : > { %v2461_v33 = vpop.eup %2460  ;;  %2480 = vrcp.f32 %v967_v30  ;;  %v969_v48 = vadd.f32 1.0, %v2459_v7  ;;  %2224 = vmatpush3.bf16.msra.mxu1 %v2428_v4 }
 0x1e3   : > { %v2463_v35 = vpop.eup %2462  ;;  %2482 = vpow2.f32 %v951_v31  ;;  %2225 = vmatprep.subr.bf16.mxu1 %v2429_v5 }
 0x1e4   : > { %v2465_v37 = vpop.eup %2464  ;;  %v989_v38 = vpack.c.bf16 %v2463_v35, %v2461_v33  ;;  %2484 = vrcp.f32 %v968_v32 }
 0x1e5   : > { %v2467_v39 = vpop.eup %2466  ;;  %2486 = vpow2.f32 %v953_v34 }
 0x1e6   : > { %v2469_v40 = vpop.eup %2468  ;;  %2203 = vmatprep.mubr.bf16.mxu0 %v989_v38  ;;  %v990_v41 = vpack.c.bf16 %v2467_v39, %v2465_v37  ;;  %2488 = vpow2.f32 %v955_v36  ;;  %2226 = vmatpush3.bf16.msra.mxu1 %v2429_v5 }
 0x1e7   : > { %v2471_v42 = vpop.eup %2470  ;;  %2490 = vrcp.f32 %v969_v48  ;;  %2227 = vmatprep.subr.bf16.mxu1 %v2430_v6 }
 0x1e8   : > { %v2473_v43 = vpop.eup %2472  ;;  %2204 = vmatmul.mubr.bf16.vlgmr.msra.gmra.mrb[0].mxu0 %v990_v41  ;;  %v991_v44 = vpack.c.bf16 %v2471_v42, %v2469_v40 }
 0x1e9   : > { %v2475_v45 = vpop.eup %2474 }
 0x1ea   : > { %v2477_v46 = vpop.eup %2476  ;;  %2207 = vmatprep.mubr.bf16.mxu0 %v991_v44  ;;  %v992_v49 = vpack.c.bf16 %v2475_v45, %v2473_v43  ;;  %2228 = vmatpush3.bf16.msra.mxu1 %v2430_v6 }
 0x1eb   : > { %v2479_v47 = vpop.eup %2478  ;;  %2229 = vmatprep.subr.bf16.mxu1 %v2431_v8 }
 0x1ec   : > { %v2481_v50 = vpop.eup %2480  ;;  %v993_v51 = vpack.c.bf16 %v2479_v47, %v2477_v46 }
 0x1ed   : > { %v2483_v52 = vpop.eup %2482 }
 0x1ee   : > { %v2485_v53 = vpop.eup %2484  ;;  %v970_v54 = vadd.f32 1.0, %v2483_v52  ;;  %2230 = vmatpush3.bf16.msra.mxu1 %v2431_v8 }
 0x1ef   : > { %v2487_v55 = vpop.eup %2486  ;;  %v994_v59 = vpack.c.bf16 %v2485_v53, %v2481_v50  ;;  %2231 = vmatprep.subr.bf16.mxu1 %v2432_v9 }
 0x1f0   : > { %2208 = vmatmul.mubr.bf16.gmra.mrb[4].mxu0 %v992_v49  ;;  %v2489_v56 = vpop.eup %2488  ;;  %2492 = vrcp.f32 %v970_v54  ;;  %v971_v57 = vadd.f32 1.0, %v2487_v55 }
 0x1f1   : > { %2211 = vmatprep.mubr.bf16.mxu0 %v993_v51  ;;  %v972_v58 = vadd.f32 1.0, %v2489_v56  ;;  %v2491_v60 = vpop.eup %2490 }
 0x1f2   : > { %2494 = vrcp.f32 %v971_v57  ;;  %2232 = vmatpush3.bf16.msra.mxu1 %v2432_v9 }
 0x1f3   : > { %2496 = vrcp.f32 %v972_v58  ;;  %2233 = vmatprep.subr.bf16.mxu1 %v2433_v10 }
 0x1f6   : > { %2234 = vmatpush3.bf16.msra.mxu1 %v2433_v10 }
 0x1f8   : > { %2212 = vmatmul.mubr.bf16.gmra.mrb[8].mxu0 %v994_v59 }
 0x1fa   : > { %v2493_v61 = vpop.eup %2492 }
 0x1fb   : > { %v995_v62 = vpack.c.bf16 %v2493_v61, %v2491_v60 }
 0x1fc   : > { %v2495_v63 = vpop.eup %2494 }
 0x1fd   : > { %v2497_v0 = vpop.eup %2496  ;;  %2215 = vmatprep.mubr.bf16.mxu0 %v995_v62 }
 0x1fe   : > { %v996_v1 = vpack.c.bf16 %v2497_v0, %v2495_v63 }
 0x200   : > { %2216 = vmatmul.mubr.bf16.gmra.mrb[12].mxu0 %v996_v1 }
 0x2bb   : > { %v2205_v12 = vpop.f32.mrb[0].mxu0 }
 0x2bc   : > { %v1111_v13 = vadd.f32 %v2205_v12, %v3195_v11  ;;  %v1102_v14 = vpop.f32.mrb[1].mxu0 }
 0x2bd   : > { %v1103_v15 = vadd.f32 %v3195_v11, %v1102_v14  ;;  %v2206_v16 = vpop.f32.mrb[2].mxu0 }
 0x2be   : > { %v1167_v17 = vsub.f32 0.0, %v1111_v13  ;;  %v1114_v18 = vadd.f32 %v2206_v16, %v3195_v11  ;;  %v1105_v19 = vpop.f32.mrb[3].mxu0 }
 0x2bf   : > { %v1165_v20 = vsub.f32 0.0, %v1103_v15  ;;  %v1106_v21 = vadd.f32 %v3195_v11, %v1105_v19 }
 0x2c0   : > { %v1185_v22 = vmul.f32 1.442695, %v1167_v17  ;;  %v1168_v23 = vsub.f32 0.0, %v1114_v18 }
 0x2c1   : > { %v1181_v24 = vmul.f32 1.442695, %v1165_v20  ;;  %v1166_v25 = vsub.f32 0.0, %v1106_v21 }
 0x2c2   : > { %2498 = vpow2.f32 %v1185_v22  ;;  %v1187_v26 = vmul.f32 1.442695, %v1168_v23 }
 0x2c3   : > { %2500 = vpow2.f32 %v1181_v24  ;;  %v1183_v27 = vmul.f32 1.442695, %v1166_v25  ;;  %v2209_v28 = vpop.f32.mrb[4].mxu0 }
 0x2c4   : > { %2502 = vpow2.f32 %v1187_v26  ;;  %v1127_v29 = vadd.f32 %v2209_v28, %v3195_v11  ;;  %v1118_v30 = vpop.f32.mrb[5].mxu0 }
 0x2c5   : > { %2504 = vpow2.f32 %v1183_v27  ;;  %v1119_v31 = vadd.f32 %v3195_v11, %v1118_v30  ;;  %v2210_v7 = vpop.f32.mrb[6].mxu0 }
 0x2c6   : > { %v1171_v32 = vsub.f32 0.0, %v1127_v29  ;;  %v1130_v33 = vadd.f32 %v2210_v7, %v3195_v11  ;;  %v1121_v34 = vpop.f32.mrb[7].mxu0 }
 0x2c7   : > { %v1169_v35 = vsub.f32 0.0, %v1119_v31  ;;  %v1122_v36 = vadd.f32 %v3195_v11, %v1121_v34 }
 0x2c8   : > { %v1193_v37 = vmul.f32 1.442695, %v1171_v32  ;;  %v1172_v38 = vsub.f32 0.0, %v1130_v33 }
 0x2c9   : > { %v1189_v39 = vmul.f32 1.442695, %v1169_v35  ;;  %v1170_v40 = vsub.f32 0.0, %v1122_v36 }
 0x2ca   : > { %2506 = vpow2.f32 %v1193_v37  ;;  %v1195_v41 = vmul.f32 1.442695, %v1172_v38 }
 0x2cb   : > { %2508 = vpow2.f32 %v1189_v39  ;;  %v1191_v42 = vmul.f32 1.442695, %v1170_v40  ;;  %v2213_v43 = vpop.f32.mrb[8].mxu0 }
 0x2cc   : > { %v2499_v44 = vpop.eup %2498  ;;  %2510 = vpow2.f32 %v1195_v41  ;;  %v1143_v45 = vadd.f32 %v2213_v43, %v3195_v11  ;;  %v1134_v46 = vpop.f32.mrb[9].mxu0 }
 0x2cd   : > { %v2501_v47 = vpop.eup %2500  ;;  %v1215_v48 = vadd.f32 1.0, %v2499_v44  ;;  %2512 = vpow2.f32 %v1191_v42  ;;  %v1135_v49 = vadd.f32 %v3195_v11, %v1134_v46  ;;  %v2214_v50 = vpop.f32.mrb[10].mxu0 }
 0x2ce   : > { %v2503_v51 = vpop.eup %2502  ;;  %v1213_v52 = vadd.f32 1.0, %v2501_v47  ;;  %v1175_v53 = vsub.f32 0.0, %v1143_v45  ;;  %v1146_v54 = vadd.f32 %v2214_v50, %v3195_v11  ;;  %v1137_v55 = vpop.f32.mrb[11].mxu0 }
 0x2cf   : > { %v2505_v56 = vpop.eup %2504  ;;  %2514 = vrcp.f32 %v1215_v48  ;;  %v1216_v57 = vadd.f32 1.0, %v2503_v51  ;;  %v1173_v58 = vsub.f32 0.0, %v1135_v49  ;;  %v1138_v59 = vadd.f32 %v3195_v11, %v1137_v55 }
 0x2d0   : > { %2516 = vrcp.f32 %v1213_v52  ;;  %v1214_v60 = vadd.f32 1.0, %v2505_v56  ;;  %v1201_v61 = vmul.f32 1.442695, %v1175_v53  ;;  %v1176_v62 = vsub.f32 0.0, %v1146_v54 }
 0x2d1   : > { %2518 = vrcp.f32 %v1216_v57  ;;  %v1197_v63 = vmul.f32 1.442695, %v1173_v58  ;;  %v1174_v0 = vsub.f32 0.0, %v1138_v59 }
 0x2d2   : > { %2520 = vrcp.f32 %v1214_v60  ;;  %v1203_v1 = vmul.f32 1.442695, %v1176_v62 }
 0x2d3   : > { %2522 = vpow2.f32 %v1201_v61  ;;  %v1199_v2 = vmul.f32 1.442695, %v1174_v0  ;;  %v2217_v4 = vpop.f32.mrb[12].mxu0 }
 0x2d4   : > { %v2507_v3 = vpop.eup %2506  ;;  %2524 = vpow2.f32 %v1197_v63  ;;  %v1159_v8 = vadd.f32 %v2217_v4, %v3195_v11  ;;  %v1150_v9 = vpop.f32.mrb[13].mxu0 }
 0x2d5   : > { %v2509_v5 = vpop.eup %2508  ;;  %v1219_v6 = vadd.f32 1.0, %v2507_v3  ;;  %2526 = vpow2.f32 %v1203_v1  ;;  %v1151_v13 = vadd.f32 %v3195_v11, %v1150_v9  ;;  %v2218_v14 = vpop.f32.mrb[14].mxu0  ;;  %v3216_v3 = vld [vmem:[%s3305_s6] ss:$0 sm:$0xff] }
 0x2d6   : > { %v2511_v10 = vpop.eup %2510  ;;  %v1217_v12 = vadd.f32 1.0, %v2509_v5  ;;  %2528 = vpow2.f32 %v1199_v2  ;;  %v1179_v17 = vsub.f32 0.0, %v1159_v8  ;;  %v1162_v18 = vadd.f32 %v2218_v14, %v3195_v11  ;;  %v1153_v19 = vpop.f32.mrb[15].mxu0 }
 0x2d7   : > { %v2513_v15 = vpop.eup %2512  ;;  %2530 = vrcp.f32 %v1219_v6  ;;  %v1220_v16 = vadd.f32 1.0, %v2511_v10  ;;  %v1177_v21 = vsub.f32 0.0, %v1151_v13  ;;  %v1154_v22 = vadd.f32 %v3195_v11, %v1153_v19 }
 0x2d8   : > { %2532 = vrcp.f32 %v1217_v12  ;;  %v1218_v20 = vadd.f32 1.0, %v2513_v15  ;;  %v1209_v24 = vmul.f32 1.442695, %v1179_v17  ;;  %v1180_v25 = vsub.f32 0.0, %v1162_v18 }
 0x2d9   : > { %v2515_v23 = vpop.eup %2514  ;;  %2534 = vrcp.f32 %v1220_v16  ;;  %v1205_v27 = vmul.f32 1.442695, %v1177_v21  ;;  %v1178_v28 = vsub.f32 0.0, %v1154_v22 }
 0x2da   : > { %v2517_v26 = vpop.eup %2516  ;;  %1503 = vst [vmem:[#allocation14 + $0x10] sm:$0xff] %v2515_v23  ;;  %2536 = vrcp.f32 %v1218_v20  ;;  %v1211_v30 = vmul.f32 1.442695, %v1180_v25 }
 0x2db   : > { %v2519_v29 = vpop.eup %2518  ;;  %1501 = vst [vmem:[#allocation14] sm:$0xff] %v2517_v26  ;;  %2538 = vpow2.f32 %v1209_v24  ;;  %v1207_v7 = vmul.f32 1.442695, %v1178_v28 }
 0x2dc   : > { %v2521_v31 = vpop.eup %2520  ;;  %1504 = vst [vmem:[#allocation14 + $0x18] sm:$0xff] %v2519_v29  ;;  %2540 = vpow2.f32 %v1205_v27  ;;  %v1246_v32 = vpack.c.bf16 %v2519_v29, %v2515_v23 }
 0x2dd   : > { %v2523_v33 = vpop.eup %2522  ;;  %1502 = vst [vmem:[#allocation14 + $0x8] sm:$0xff] %v2521_v31  ;;  %2542 = vpow2.f32 %v1211_v30  ;;  %v1245_v11 = vpack.c.bf16 %v2521_v31, %v2517_v26 }
 0x2de   : > { %v2525_v34 = vpop.eup %2524  ;;  %v1223_v35 = vadd.f32 1.0, %v2523_v33  ;;  %2544 = vpow2.f32 %v1207_v7 }
 0x2df   : > { %v2527_v36 = vpop.eup %2526  ;;  %v1221_v37 = vadd.f32 1.0, %v2525_v34  ;;  %2235 = vmatprep.mubr.bf16.mxu1 %v1245_v11 }
 0x2e0   : > { %v2529_v38 = vpop.eup %2528  ;;  %2546 = vrcp.f32 %v1223_v35  ;;  %v1224_v39 = vadd.f32 1.0, %v2527_v36  ;;  %2236 = vmatmul.mubr.bf16.vlgmr.msra.gmra.mrb[0].mxu1 %v1246_v32 }
 0x2e1   : > { %v2531_v40 = vpop.eup %2530  ;;  %2548 = vrcp.f32 %v1221_v37  ;;  %v1222_v41 = vadd.f32 1.0, %v2529_v38 }
 0x2e2   : > { %v2533_v42 = vpop.eup %2532  ;;  %1507 = vst [vmem:[#allocation14 + $0x30] sm:$0xff] %v2531_v40  ;;  %2550 = vrcp.f32 %v1224_v39 }
 0x2e3   : > { %v2535_v43 = vpop.eup %2534  ;;  %1505 = vst [vmem:[#allocation14 + $0x20] sm:$0xff] %v2533_v42  ;;  %2552 = vrcp.f32 %v1222_v41 }
 0x2e4   : > { %v2537_v44 = vpop.eup %2536  ;;  %1508 = vst [vmem:[#allocation14 + $0x38] sm:$0xff] %v2535_v43  ;;  %v1248_v45 = vpack.c.bf16 %v2535_v43, %v2531_v40 }
 0x2e5   : > { %v2539_v46 = vpop.eup %2538  ;;  %1506 = vst [vmem:[#allocation14 + $0x28] sm:$0xff] %v2537_v44  ;;  %v1247_v47 = vpack.c.bf16 %v2537_v44, %v2533_v42 }
 0x2e6   : > { %v2541_v48 = vpop.eup %2540  ;;  %v1227_v49 = vadd.f32 1.0, %v2539_v46 }
 0x2e7   : > { %v2543_v50 = vpop.eup %2542  ;;  %v1225_v51 = vadd.f32 1.0, %v2541_v48  ;;  %2239 = vmatprep.mubr.bf16.mxu1 %v1247_v47 }
 0x2e8   : > { %v2545_v52 = vpop.eup %2544  ;;  %2554 = vrcp.f32 %v1227_v49  ;;  %v1228_v53 = vadd.f32 1.0, %v2543_v50  ;;  %2240 = vmatmul.mubr.bf16.gmra.mrb[4].mxu1 %v1248_v45 }
 0x2e9   : > { %2556 = vrcp.f32 %v1225_v51  ;;  %v1226_v54 = vadd.f32 1.0, %v2545_v52 }
 0x2ea   : > { %v2547_v55 = vpop.eup %2546  ;;  %2558 = vrcp.f32 %v1228_v53 }
 0x2eb   : > { %v2549_v56 = vpop.eup %2548  ;;  %1511 = vst [vmem:[#allocation14 + $0x50] sm:$0xff] %v2547_v55  ;;  %2560 = vrcp.f32 %v1226_v54 }
 0x2ec   : > { %v2551_v57 = vpop.eup %2550  ;;  %1509 = vst [vmem:[#allocation14 + $0x40] sm:$0xff] %v2549_v56 }
 0x2ed   : > { %v2553_v58 = vpop.eup %2552  ;;  %1512 = vst [vmem:[#allocation14 + $0x58] sm:$0xff] %v2551_v57  ;;  %v1250_v59 = vpack.c.bf16 %v2551_v57, %v2547_v55 }
 0x2ee   : > { %1510 = vst [vmem:[#allocation14 + $0x48] sm:$0xff] %v2553_v58  ;;  %v1249_v60 = vpack.c.bf16 %v2553_v58, %v2549_v56 }
 0x2f0   : > { %2243 = vmatprep.mubr.bf16.mxu1 %v1249_v60 }
 0x2f1   : > { %2244 = vmatmul.mubr.bf16.gmra.mrb[8].mxu1 %v1250_v59 }
 0x2f2   : > { %v2555_v61 = vpop.eup %2554 }
 0x2f3   : > { %v2557_v62 = vpop.eup %2556  ;;  %1515 = vst [vmem:[#allocation14 + $0x70] sm:$0xff] %v2555_v61 }
 0x2f4   : > { %v2559_v63 = vpop.eup %2558  ;;  %1513 = vst [vmem:[#allocation14 + $0x60] sm:$0xff] %v2557_v62 }
 0x2f5   : > { %v2561_v0 = vpop.eup %2560  ;;  %1516 = vst [vmem:[#allocation14 + $0x78] sm:$0xff] %v2559_v63  ;;  %v1252_v1 = vpack.c.bf16 %v2559_v63, %v2555_v61 }
 0x2f6   : > { %1514 = vst [vmem:[#allocation14 + $0x68] sm:$0xff] %v2561_v0  ;;  %v1251_v2 = vpack.c.bf16 %v2561_v0, %v2557_v62 }
 0x2f8   : > { %2247 = vmatprep.mubr.bf16.mxu1 %v1251_v2 }
 0x2f9   : > { %2248 = vmatmul.mubr.bf16.gmra.mrb[12].mxu1 %v1252_v1 }
 0x3b3   : > { %v2237_v4 = vpop.f32.mrb[0].mxu1 }
 0x3b4   : > { %v1367_v5 = vadd.f32 %v2237_v4, %v3216_v3  ;;  %v1358_v6 = vpop.f32.mrb[1].mxu1 }
 0x3b5   : > { %v1359_v8 = vadd.f32 %v3216_v3, %v1358_v6  ;;  %v2238_v9 = vpop.f32.mrb[2].mxu1 }
 0x3b6   : > { %v1423_v10 = vsub.f32 0.0, %v1367_v5  ;;  %v1370_v12 = vadd.f32 %v2238_v9, %v3216_v3  ;;  %v1361_v13 = vpop.f32.mrb[3].mxu1 }
 0x3b7   : > { %v1421_v14 = vsub.f32 0.0, %v1359_v8  ;;  %v1362_v15 = vadd.f32 %v3216_v3, %v1361_v13 }
 0x3b8   : > { %v1441_v16 = vmul.f32 1.442695, %v1423_v10  ;;  %v1424_v17 = vsub.f32 0.0, %v1370_v12 }
 0x3b9   : > { %v1437_v18 = vmul.f32 1.442695, %v1421_v14  ;;  %v1422_v19 = vsub.f32 0.0, %v1362_v15 }
 0x3ba   : > { %2562 = vpow2.f32 %v1441_v16  ;;  %v1443_v20 = vmul.f32 1.442695, %v1424_v17 }
 0x3bb   : > { %2564 = vpow2.f32 %v1437_v18  ;;  %v1439_v21 = vmul.f32 1.442695, %v1422_v19  ;;  %v2241_v22 = vpop.f32.mrb[4].mxu1 }
 0x3bc   : > { %2566 = vpow2.f32 %v1443_v20  ;;  %v1383_v23 = vadd.f32 %v2241_v22, %v3216_v3  ;;  %v1374_v24 = vpop.f32.mrb[5].mxu1 }
 0x3bd   : > { %2568 = vpow2.f32 %v1439_v21  ;;  %v1375_v25 = vadd.f32 %v3216_v3, %v1374_v24  ;;  %v2242_v26 = vpop.f32.mrb[6].mxu1 }
 0x3be   : > { %v1427_v27 = vsub.f32 0.0, %v1383_v23  ;;  %v1386_v28 = vadd.f32 %v2242_v26, %v3216_v3  ;;  %v1377_v29 = vpop.f32.mrb[7].mxu1 }
 0x3bf   : > { %v1425_v30 = vsub.f32 0.0, %v1375_v25  ;;  %v1378_v31 = vadd.f32 %v3216_v3, %v1377_v29 }
 0x3c0   : > { %v1449_v7 = vmul.f32 1.442695, %v1427_v27  ;;  %v1428_v32 = vsub.f32 0.0, %v1386_v28 }
 0x3c1   : > { %v1445_v33 = vmul.f32 1.442695, %v1425_v30  ;;  %v1426_v11 = vsub.f32 0.0, %v1378_v31 }
 0x3c2   : > { %2570 = vpow2.f32 %v1449_v7  ;;  %v1451_v34 = vmul.f32 1.442695, %v1428_v32 }
 0x3c3   : > { %2572 = vpow2.f32 %v1445_v33  ;;  %v1447_v35 = vmul.f32 1.442695, %v1426_v11 }
 0x3c4   : > { %v2563_v36 = vpop.eup %2562  ;;  %2574 = vpow2.f32 %v1451_v34  ;;  %v2245_v37 = vpop.f32.mrb[8].mxu1 }
 0x3c5   : > { %v2565_v38 = vpop.eup %2564  ;;  %v1471_v39 = vadd.f32 1.0, %v2563_v36  ;;  %2576 = vpow2.f32 %v1447_v35  ;;  %v1399_v40 = vadd.f32 %v2245_v37, %v3216_v3  ;;  %v1390_v41 = vpop.f32.mrb[9].mxu1 }
 0x3c6   : > { %v2567_v42 = vpop.eup %2566  ;;  %v1469_v43 = vadd.f32 1.0, %v2565_v38  ;;  %v1391_v44 = vadd.f32 %v3216_v3, %v1390_v41  ;;  %v2246_v45 = vpop.f32.mrb[10].mxu1 }
 0x3c7   : > { %v2569_v46 = vpop.eup %2568  ;;  %2578 = vrcp.f32 %v1471_v39  ;;  %v1472_v47 = vadd.f32 1.0, %v2567_v42  ;;  %v1431_v48 = vsub.f32 0.0, %v1399_v40  ;;  %v1402_v49 = vadd.f32 %v2246_v45, %v3216_v3  ;;  %v1393_v50 = vpop.f32.mrb[11].mxu1 }
 0x3c8   : > { %2580 = vrcp.f32 %v1469_v43  ;;  %v1470_v51 = vadd.f32 1.0, %v2569_v46  ;;  %v1429_v52 = vsub.f32 0.0, %v1391_v44  ;;  %v1394_v53 = vadd.f32 %v3216_v3, %v1393_v50 }
 0x3c9   : > { %2582 = vrcp.f32 %v1472_v47  ;;  %v1457_v54 = vmul.f32 1.442695, %v1431_v48  ;;  %v1432_v55 = vsub.f32 0.0, %v1402_v49 }
 0x3ca   : > { %2584 = vrcp.f32 %v1470_v51  ;;  %v1453_v56 = vmul.f32 1.442695, %v1429_v52  ;;  %v1430_v57 = vsub.f32 0.0, %v1394_v53 }
 0x3cb   : > { %2586 = vpow2.f32 %v1457_v54  ;;  %v1459_v58 = vmul.f32 1.442695, %v1432_v55 }
 0x3cc   : > { %v2571_v59 = vpop.eup %2570  ;;  %2588 = vpow2.f32 %v1453_v56  ;;  %v1455_v60 = vmul.f32 1.442695, %v1430_v57  ;;  %v2249_v61 = vpop.f32.mrb[12].mxu1 }
 0x3cd   : > { %v2573_v62 = vpop.eup %2572  ;;  %v1475_v63 = vadd.f32 1.0, %v2571_v59  ;;  %2590 = vpow2.f32 %v1459_v58  ;;  %v1415_v0 = vadd.f32 %v2249_v61, %v3216_v3  ;;  %v1406_v1 = vpop.f32.mrb[13].mxu1 }
 0x3ce   : > { %v2575_v2 = vpop.eup %2574  ;;  %v1473_v4 = vadd.f32 1.0, %v2573_v62  ;;  %2592 = vpow2.f32 %v1455_v60  ;;  %v1407_v5 = vadd.f32 %v3216_v3, %v1406_v1  ;;  %v2250_v6 = vpop.f32.mrb[14].mxu1 }
 0x3cf   : > { %v2577_v8 = vpop.eup %2576  ;;  %2594 = vrcp.f32 %v1475_v63  ;;  %v1476_v9 = vadd.f32 1.0, %v2575_v2  ;;  %v1435_v10 = vsub.f32 0.0, %v1415_v0  ;;  %v1418_v12 = vadd.f32 %v2250_v6, %v3216_v3  ;;  %v1409_v13 = vpop.f32.mrb[15].mxu1 }
 0x3d0   : > { %2596 = vrcp.f32 %v1473_v4  ;;  %v1474_v14 = vadd.f32 1.0, %v2577_v8  ;;  %v1433_v15 = vsub.f32 0.0, %v1407_v5  ;;  %v1410_v16 = vadd.f32 %v3216_v3, %v1409_v13 }
 0x3d1   : > { %v2579_v17 = vpop.eup %2578  ;;  %2598 = vrcp.f32 %v1476_v9  ;;  %v1465_v18 = vmul.f32 1.442695, %v1435_v10  ;;  %v1436_v19 = vsub.f32 0.0, %v1418_v12 }
 0x3d2   : > { %v2581_v20 = vpop.eup %2580  ;;  %2600 = vrcp.f32 %v1474_v14  ;;  %v1461_v21 = vmul.f32 1.442695, %v1433_v15  ;;  %v1434_v22 = vsub.f32 0.0, %v1410_v16 }
 0x3d3   : > { %v2583_v23 = vpop.eup %2582  ;;  %2602 = vpow2.f32 %v1465_v18  ;;  %v1467_v24 = vmul.f32 1.442695, %v1436_v19 }
 0x3d4   : > { %v2585_v25 = vpop.eup %2584  ;;  %v1518_v26 = vpack.c.bf16 %v2583_v23, %v2579_v17  ;;  %2604 = vpow2.f32 %v1461_v21  ;;  %v1463_v27 = vmul.f32 1.442695, %v1434_v22 }
 0x3d5   : > { %v2587_v28 = vpop.eup %2586  ;;  %v1517_v29 = vpack.c.bf16 %v2585_v25, %v2581_v20  ;;  %2606 = vpow2.f32 %v1467_v24 }
 0x3d6   : > { %v2589_v30 = vpop.eup %2588  ;;  %1526 = vst [vmem:[#allocation3 + $0x8] sm:$0xff] %v1518_v26  ;;  %v1479_v3 = vadd.f32 1.0, %v2587_v28  ;;  %2608 = vpow2.f32 %v1463_v27 }
 0x3d7   : > { %v2591_v31 = vpop.eup %2590  ;;  %1525 = vst [vmem:[#allocation3] sm:$0xff] %v1517_v29  ;;  %v1477_v7 = vadd.f32 1.0, %v2589_v30 }
 0x3d8   : > { %v2593_v32 = vpop.eup %2592  ;;  %2610 = vrcp.f32 %v1479_v3  ;;  %v1480_v33 = vadd.f32 1.0, %v2591_v31 }
 0x3d9   : > { %v2595_v11 = vpop.eup %2594  ;;  %2612 = vrcp.f32 %v1477_v7  ;;  %v1478_v34 = vadd.f32 1.0, %v2593_v32 }
 0x3da   : > { %v2597_v35 = vpop.eup %2596  ;;  %2614 = vrcp.f32 %v1480_v33 }
 0x3db   : > { %v2599_v36 = vpop.eup %2598  ;;  %2616 = vrcp.f32 %v1478_v34 }
 0x3dc   : > { %v2601_v37 = vpop.eup %2600  ;;  %v1520_v38 = vpack.c.bf16 %v2599_v36, %v2595_v11 }
 0x3dd   : > { %v2603_v39 = vpop.eup %2602  ;;  %v1519_v40 = vpack.c.bf16 %v2601_v37, %v2597_v35 }
 0x3de   : > { %v2605_v41 = vpop.eup %2604  ;;  %1528 = vst [vmem:[#allocation3 + $0x18] sm:$0xff] %v1520_v38  ;;  %v1483_v42 = vadd.f32 1.0, %v2603_v39 }
 0x3df   : > { %v2607_v43 = vpop.eup %2606  ;;  %1527 = vst [vmem:[#allocation3 + $0x10] sm:$0xff] %v1519_v40  ;;  %v1481_v44 = vadd.f32 1.0, %v2605_v41 }
 0x3e0   : > { %v2609_v45 = vpop.eup %2608  ;;  %2618 = vrcp.f32 %v1483_v42  ;;  %v1484_v46 = vadd.f32 1.0, %v2607_v43 }
 0x3e1   : > { %2620 = vrcp.f32 %v1481_v44  ;;  %v1482_v47 = vadd.f32 1.0, %v2609_v45 }
 0x3e2   : > { %v2611_v48 = vpop.eup %2610  ;;  %2622 = vrcp.f32 %v1484_v46 }
 0x3e3   : > { %v2613_v49 = vpop.eup %2612  ;;  %2624 = vrcp.f32 %v1482_v47 }
 0x3e4   : > { %v2615_v50 = vpop.eup %2614 }
 0x3e5   : > { %v2617_v51 = vpop.eup %2616  ;;  %v1522_v52 = vpack.c.bf16 %v2615_v50, %v2611_v48 }
 0x3e6   : > { %v1521_v53 = vpack.c.bf16 %v2617_v51, %v2613_v49 }
 0x3e7   : > { %1530 = vst [vmem:[#allocation3 + $0x28] sm:$0xff] %v1522_v52 }
 0x3e8   : > { %1529 = vst [vmem:[#allocation3 + $0x20] sm:$0xff] %v1521_v53 }
 0x3ea   : > { %v2619_v54 = vpop.eup %2618 }
 0x3eb   : > { %v2621_v55 = vpop.eup %2620 }
 0x3ec   : > { %v2623_v56 = vpop.eup %2622 }
 0x3ed   : > { %v2625_v57 = vpop.eup %2624  ;;  %v1524_v58 = vpack.c.bf16 %v2623_v56, %v2619_v54 }
 0x3ee   : > { %v1523_v59 = vpack.c.bf16 %v2625_v57, %v2621_v55 }
 0x3ef   : > { %1532 = vst [vmem:[#allocation3 + $0x38] sm:$0xff] %v1524_v58 }
 0x3f0   : > { %1531 = vst [vmem:[#allocation3 + $0x30] sm:$0xff] %v1523_v59 }
 0x3f1 PF: > { %p2074_p1 = scmp.ne.s32.totalorder %s2914_s13, 1 }
 0x3f2   : > { %v2626_v60 = vld [vmem:[#allocation12] sm:$0xff] (!%p2074_p1)   ;;  %v2627_v61 = vld [vmem:[#allocation12 + $0x8] sm:$0xff] (!%p2074_p1)   ;;  %v2628_v62 = vld [vmem:[#allocation12 + $0x10] sm:$0xff] (!%p2074_p1)  }
 0x3f3   : > { %1536 = sbr.rel (%p2074_p1) target bundleno = 1314 (0x522), region = 92  ;;  %2251 = vmatprep.subr.bf16.mxu0 (!%p2074_p1), %v2626_v60  ;;  %2299 = vmatprep.subr.bf16.mxu1 (!%p2074_p1), %v2626_v60  ;;  %v2629_v63 = vld [vmem:[#allocation12 + $0x18] sm:$0xff] (!%p2074_p1)   ;;  %v1537_v0 = vld [vmem:[#allocation3] sm:$0xff] (!%p2074_p1)  ;;  %v2631_v4 = vld [vmem:[#allocation12 + $0x28] sm:$0xff] (!%p2074_p1)  }
 0x3f4   : > { %2252 = vmatpush3.bf16.msra.mxu0 (!%p2074_p1), %v2626_v60  ;;  %2307 = vmatpush3.bf16.msra.mxu1 (!%p2074_p1), %v2626_v60  ;;  %v1541_v1 = vld [vmem:[#allocation3 + $0x20] sm:$0xff] (!%p2074_p1)  ;;  %v2632_v5 = vld [vmem:[#allocation12 + $0x30] sm:$0xff] (!%p2074_p1)   ;;  %v2633_v6 = vld [vmem:[#allocation12 + $0x38] sm:$0xff] (!%p2074_p1)  }
 0x3f5   : > { %2253 = vmatprep.subr.bf16.mxu0 (!%p2074_p1), %v2627_v61  ;;  %2300 = vmatprep.subr.bf16.mxu1 (!%p2074_p1), %v2627_v61  ;;  %v2630_v2 = vld [vmem:[#allocation12 + $0x20] sm:$0xff] (!%p2074_p1)   ;;  %v1538_v8 = vld [vmem:[#allocation3 + $0x8] sm:$0xff] (!%p2074_p1)  ;;  %v1539_v10 = vld [vmem:[#allocation3 + $0x10] sm:$0xff] (!%p2074_p1) }
 0x3f6   : > { %2267 = vmatprep.mubr.bf16.mxu0 (!%p2074_p1), %v1537_v0  ;;  %2275 = vmatprep.mubr.bf16.mxu1 (!%p2074_p1), %v1541_v1  ;;  %v1542_v9 = vld [vmem:[#allocation3 + $0x28] sm:$0xff] (!%p2074_p1)  ;;  %v1540_v13 = vld [vmem:[#allocation3 + $0x18] sm:$0xff] (!%p2074_p1)  ;;  %v3238_v15 = vld [vmem:[%s3307_s8] ss:$0 sm:$0xff] (!%p2074_p1) }
 0x3f7   : > { %v1543_v12 = vld [vmem:[#allocation3 + $0x30] sm:$0xff] (!%p2074_p1)  ;;  %v1544_v14 = vld [vmem:[#allocation3 + $0x38] sm:$0xff] (!%p2074_p1) }
 0x3f8   : > { %2254 = vmatpush3.bf16.msra.mxu0 (!%p2074_p1), %v2627_v61  ;;  %2308 = vmatpush3.bf16.msra.mxu1 (!%p2074_p1), %v2627_v61 }
 0x3f9   : > { %2255 = vmatprep.subr.bf16.mxu0 (!%p2074_p1), %v2628_v62  ;;  %2301 = vmatprep.subr.bf16.mxu1 (!%p2074_p1), %v2628_v62 }
 0x3fc   : > { %2256 = vmatpush3.bf16.msra.mxu0 %v2628_v62  ;;  %2309 = vmatpush3.bf16.msra.mxu1 %v2628_v62 }
 0x3fd   : > { %2257 = vmatprep.subr.bf16.mxu0 %v2629_v63  ;;  %2302 = vmatprep.subr.bf16.mxu1 %v2629_v63 }
 0x400   : > { %2258 = vmatpush3.bf16.msra.mxu0 %v2629_v63  ;;  %2310 = vmatpush3.bf16.msra.mxu1 %v2629_v63 }
 0x401   : > { %2259 = vmatprep.subr.bf16.mxu0 %v2630_v2  ;;  %2303 = vmatprep.subr.bf16.mxu1 %v2630_v2 }
 0x404   : > { %2260 = vmatpush3.bf16.msra.mxu0 %v2630_v2  ;;  %2311 = vmatpush3.bf16.msra.mxu1 %v2630_v2 }
 0x405   : > { %2261 = vmatprep.subr.bf16.mxu0 %v2631_v4  ;;  %2304 = vmatprep.subr.bf16.mxu1 %v2631_v4 }
 0x408   : > { %2262 = vmatpush3.bf16.msra.mxu0 %v2631_v4  ;;  %2312 = vmatpush3.bf16.msra.mxu1 %v2631_v4 }
 0x409   : > { %2263 = vmatprep.subr.bf16.mxu0 %v2632_v5  ;;  %2305 = vmatprep.subr.bf16.mxu1 %v2632_v5 }
 0x40c   : > { %2264 = vmatpush3.bf16.msra.mxu0 %v2632_v5  ;;  %2313 = vmatpush3.bf16.msra.mxu1 %v2632_v5 }
 0x40d   : > { %2265 = vmatprep.subr.bf16.mxu0 %v2633_v6  ;;  %2306 = vmatprep.subr.bf16.mxu1 %v2633_v6 }
 0x410   : > { %2266 = vmatpush3.bf16.msra.mxu0 %v2633_v6  ;;  %2314 = vmatpush3.bf16.msra.mxu1 %v2633_v6 }
 0x413   : > { %2268 = vmatmul.mubr.bf16.vlgmr.msra.gmra.mrb[0].mxu0 %v1538_v8  ;;  %2276 = vmatmul.mubr.bf16.vlgmr.msra.gmra.mrb[0].mxu1 %v1542_v9 }
 0x414   : > { %2271 = vmatprep.mubr.bf16.mxu0 %v1539_v10  ;;  %2279 = vmatprep.mubr.bf16.mxu1 %v1543_v12 }
 0x41b   : > { %2272 = vmatmul.mubr.bf16.gmra.mrb[4].mxu0 %v1540_v13  ;;  %2280 = vmatmul.mubr.bf16.gmra.mrb[4].mxu1 %v1544_v14 }
 0x4e6   : > { %v2269_v16 = vpop.f32.mrb[0].mxu0  ;;  %v2277_v17 = vpop.f32.mrb[0].mxu1 }
 0x4e7   : > { %v1659_v18 = vadd.f32 %v2269_v16, %v3238_v15  ;;  %v1691_v19 = vadd.f32 %v2277_v17, %v3238_v15  ;;  %v1650_v20 = vpop.f32.mrb[1].mxu0  ;;  %v1682_v21 = vpop.f32.mrb[1].mxu1 }
 0x4e8   : > { %v1651_v22 = vadd.f32 %v3238_v15, %v1650_v20  ;;  %v1683_v23 = vadd.f32 %v3238_v15, %v1682_v21  ;;  %v2270_v24 = vpop.f32.mrb[2].mxu0  ;;  %v2278_v25 = vpop.f32.mrb[2].mxu1 }
 0x4e9   : > { %v1715_v26 = vsub.f32 0.0, %v1659_v18  ;;  %v1723_v27 = vsub.f32 0.0, %v1691_v19  ;;  %v1662_v28 = vadd.f32 %v2270_v24, %v3238_v15  ;;  %v1694_v29 = vadd.f32 %v2278_v25, %v3238_v15  ;;  %v1653_v30 = vpop.f32.mrb[3].mxu0  ;;  %v1685_v3 = vpop.f32.mrb[3].mxu1 }
 0x4ea   : > { %v1713_v31 = vsub.f32 0.0, %v1651_v22  ;;  %v1721_v7 = vsub.f32 0.0, %v1683_v23  ;;  %v1654_v32 = vadd.f32 %v3238_v15, %v1653_v30  ;;  %v1686_v33 = vadd.f32 %v3238_v15, %v1685_v3 }
 0x4eb   : > { %v1733_v11 = vmul.f32 1.442695, %v1715_v26  ;;  %v1749_v34 = vmul.f32 1.442695, %v1723_v27  ;;  %v1716_v35 = vsub.f32 0.0, %v1662_v28  ;;  %v1724_v36 = vsub.f32 0.0, %v1694_v29 }
 0x4ec   : > { %v1729_v37 = vmul.f32 1.442695, %v1713_v31  ;;  %v1745_v38 = vmul.f32 1.442695, %v1721_v7  ;;  %v1714_v39 = vsub.f32 0.0, %v1654_v32  ;;  %v1722_v40 = vsub.f32 0.0, %v1686_v33 }
 0x4ed   : > { %2634 = vpow2.f32 %v1733_v11  ;;  %v1735_v41 = vmul.f32 1.442695, %v1716_v35  ;;  %v1751_v42 = vmul.f32 1.442695, %v1724_v36 }
 0x4ee   : > { %2636 = vpow2.f32 %v1749_v34  ;;  %v2273_v43 = vpop.f32.mrb[4].mxu0  ;;  %v2281_v44 = vpop.f32.mrb[4].mxu1  ;;  %v1731_v45 = vmul.f32 1.442695, %v1714_v39  ;;  %v1747_v50 = vmul.f32 1.442695, %v1722_v40 }
 0x4ef   : > { %2638 = vpow2.f32 %v1729_v37  ;;  %v1675_v46 = vadd.f32 %v2273_v43, %v3238_v15  ;;  %v1707_v47 = vadd.f32 %v2281_v44, %v3238_v15  ;;  %v1666_v48 = vpop.f32.mrb[5].mxu0  ;;  %v1698_v49 = vpop.f32.mrb[5].mxu1 }
 0x4f0   : > { %2640 = vpow2.f32 %v1745_v38  ;;  %v1667_v51 = vadd.f32 %v3238_v15, %v1666_v48  ;;  %v1699_v52 = vadd.f32 %v3238_v15, %v1698_v49  ;;  %v2274_v53 = vpop.f32.mrb[6].mxu0  ;;  %v2282_v54 = vpop.f32.mrb[6].mxu1 }
 0x4f1   : > { %2642 = vpow2.f32 %v1735_v41  ;;  %v1719_v55 = vsub.f32 0.0, %v1675_v46  ;;  %v1727_v56 = vsub.f32 0.0, %v1707_v47  ;;  %v1678_v57 = vadd.f32 %v2274_v53, %v3238_v15  ;;  %v1669_v58 = vpop.f32.mrb[7].mxu0  ;;  %v1701_v59 = vpop.f32.mrb[7].mxu1 }
 0x4f2   : > { %2644 = vpow2.f32 %v1751_v42  ;;  %v1717_v60 = vsub.f32 0.0, %v1667_v51  ;;  %v1725_v61 = vsub.f32 0.0, %v1699_v52  ;;  %v1710_v17 = vadd.f32 %v2282_v54, %v3238_v15 }
 0x4f3   : > { %2646 = vpow2.f32 %v1731_v45  ;;  %v1741_v62 = vmul.f32 1.442695, %v1719_v55  ;;  %v1757_v63 = vmul.f32 1.442695, %v1727_v56  ;;  %v1720_v0 = vsub.f32 0.0, %v1678_v57 }
 0x4f4   : > { %2648 = vpow2.f32 %v1747_v50  ;;  %v1737_v1 = vmul.f32 1.442695, %v1717_v60  ;;  %v1753_v2 = vmul.f32 1.442695, %v1725_v61  ;;  %v1670_v20 = vadd.f32 %v3238_v15, %v1669_v58 }
 0x4f5   : > { %2650 = vpow2.f32 %v1741_v62  ;;  %v1743_v4 = vmul.f32 1.442695, %v1720_v0  ;;  %v1702_v23 = vadd.f32 %v3238_v15, %v1701_v59  ;;  %v1728_v28 = vsub.f32 0.0, %v1710_v17 }
 0x4f6   : > { %2652 = vpow2.f32 %v1757_v63  ;;  %v1718_v3 = vsub.f32 0.0, %v1670_v20 }
 0x4f7   : > { %v2635_v5 = vpop.eup %2634  ;;  %2654 = vpow2.f32 %v1737_v1  ;;  %v1726_v32 = vsub.f32 0.0, %v1702_v23  ;;  %v1759_v35 = vmul.f32 1.442695, %v1728_v28 }
 0x4f8   : > { %v2637_v6 = vpop.eup %2636  ;;  %v1763_v8 = vadd.f32 1.0, %v2635_v5  ;;  %2656 = vpow2.f32 %v1753_v2  ;;  %v1739_v38 = vmul.f32 1.442695, %v1718_v3 }
 0x4f9   : > { %v2639_v9 = vpop.eup %2638  ;;  %v1771_v10 = vadd.f32 1.0, %v2637_v6  ;;  %2658 = vpow2.f32 %v1743_v4  ;;  %v1755_v40 = vmul.f32 1.442695, %v1726_v32 }
 0x4fa   : > { %v2641_v12 = vpop.eup %2640  ;;  %2660 = vrcp.f32 %v1763_v8  ;;  %v1761_v13 = vadd.f32 1.0, %v2639_v9 }
 0x4fb   : > { %v2643_v14 = vpop.eup %2642  ;;  %2662 = vrcp.f32 %v1771_v10  ;;  %v1769_v16 = vadd.f32 1.0, %v2641_v12 }
 0x4fc   : > { %v2645_v18 = vpop.eup %2644  ;;  %2664 = vrcp.f32 %v1761_v13  ;;  %v1764_v19 = vadd.f32 1.0, %v2643_v14 }
 0x4fd   : > { %v2647_v21 = vpop.eup %2646  ;;  %2666 = vrcp.f32 %v1769_v16  ;;  %v1772_v22 = vadd.f32 1.0, %v2645_v18 }
 0x4fe   : > { %v2649_v24 = vpop.eup %2648  ;;  %2668 = vrcp.f32 %v1764_v19  ;;  %v1762_v25 = vadd.f32 1.0, %v2647_v21 }
 0x4ff   : > { %v2651_v26 = vpop.eup %2650  ;;  %2670 = vrcp.f32 %v1772_v22  ;;  %v1770_v27 = vadd.f32 1.0, %v2649_v24 }
 0x500   : > { %v2653_v29 = vpop.eup %2652  ;;  %2672 = vrcp.f32 %v1762_v25  ;;  %v1767_v30 = vadd.f32 1.0, %v2651_v26 }
 0x501   : > { %v2655_v31 = vpop.eup %2654  ;;  %2674 = vrcp.f32 %v1770_v27  ;;  %v1775_v7 = vadd.f32 1.0, %v2653_v29 }
 0x502   : > { %v2657_v33 = vpop.eup %2656  ;;  %2676 = vrcp.f32 %v1767_v30  ;;  %v1765_v11 = vadd.f32 1.0, %v2655_v31 }
 0x503   : > { %v2659_v34 = vpop.eup %2658  ;;  %2678 = vrcp.f32 %v1775_v7  ;;  %v1773_v15 = vadd.f32 1.0, %v2657_v33 }
 0x504   : > { %v2661_v36 = vpop.eup %2660  ;;  %2680 = vrcp.f32 %v1765_v11  ;;  %v1768_v37 = vadd.f32 1.0, %v2659_v34 }
 0x505   : > { %v2663_v39 = vpop.eup %2662  ;;  %1795 = vst [vmem:[#allocation13 + $0x10] sm:$0xff] %v2661_v36  ;;  %2682 = vrcp.f32 %v1773_v15 }
 0x506   : > { %v2665_v41 = vpop.eup %2664  ;;  %1803 = vst [vmem:[#allocation13 + $0x50] sm:$0xff] %v2663_v39  ;;  %2684 = vrcp.f32 %v1768_v37 }
 0x507   : > { %v2667_v42 = vpop.eup %2666  ;;  %1793 = vst [vmem:[#allocation13] sm:$0xff] %v2665_v41  ;;  %2686 = vpow2.f32 %v1759_v35 }
 0x508   : > { %v2669_v43 = vpop.eup %2668  ;;  %1801 = vst [vmem:[#allocation13 + $0x40] sm:$0xff] %v2667_v42  ;;  %2688 = vpow2.f32 %v1739_v38 }
 0x509   : > { %v2671_v44 = vpop.eup %2670  ;;  %1796 = vst [vmem:[#allocation13 + $0x18] sm:$0xff] %v2669_v43  ;;  %2690 = vpow2.f32 %v1755_v40 }
 0x50a   : > { %v2673_v45 = vpop.eup %2672  ;;  %1804 = vst [vmem:[#allocation13 + $0x58] sm:$0xff] %v2671_v44 }
 0x50b   : > { %v2675_v46 = vpop.eup %2674  ;;  %1794 = vst [vmem:[#allocation13 + $0x8] sm:$0xff] %v2673_v45 }
 0x50c   : > { %v2677_v47 = vpop.eup %2676  ;;  %1802 = vst [vmem:[#allocation13 + $0x48] sm:$0xff] %v2675_v46 }
 0x50d   : > { %v2679_v48 = vpop.eup %2678  ;;  %1799 = vst [vmem:[#allocation13 + $0x30] sm:$0xff] %v2677_v47 }
 0x50e   : > { %v2681_v49 = vpop.eup %2680  ;;  %1807 = vst [vmem:[#allocation13 + $0x70] sm:$0xff] %v2679_v48 }
 0x50f   : > { %v2683_v50 = vpop.eup %2682  ;;  %1797 = vst [vmem:[#allocation13 + $0x20] sm:$0xff] %v2681_v49 }
 0x510   : > { %v2685_v51 = vpop.eup %2684  ;;  %1805 = vst [vmem:[#allocation13 + $0x60] sm:$0xff] %v2683_v50 }
 0x511   : > { %v2687_v52 = vpop.eup %2686  ;;  %1800 = vst [vmem:[#allocation13 + $0x38] sm:$0xff] %v2685_v51 }
 0x512   : > { %v2689_v53 = vpop.eup %2688  ;;  %v1776_v54 = vadd.f32 1.0, %v2687_v52 }
 0x513   : > { %v2691_v55 = vpop.eup %2690  ;;  %v1766_v56 = vadd.f32 1.0, %v2689_v53 }
 0x514   : > { %2692 = vrcp.f32 %v1776_v54  ;;  %v1774_v57 = vadd.f32 1.0, %v2691_v55 }
 0x515   : > { %2694 = vrcp.f32 %v1766_v56 }
 0x516   : > { %2696 = vrcp.f32 %v1774_v57 }
 0x51e   : > { %v2693_v58 = vpop.eup %2692 }
 0x51f   : > { %v2695_v59 = vpop.eup %2694  ;;  %1808 = vst [vmem:[#allocation13 + $0x78] sm:$0xff] %v2693_v58 }
 0x520   : > { %v2697_v60 = vpop.eup %2696  ;;  %1798 = vst [vmem:[#allocation13 + $0x28] sm:$0xff] %v2695_v59 }
 0x521   : > { %1806 = vst [vmem:[#allocation13 + $0x68] sm:$0xff] %v2697_v60 }
 0x522 PF: > { %p2084_p2 = scmp.ne.s32.totalorder %s3013_s16, 1 }
 0x524   : > { %1816 = sbr.rel (%p2084_p2) target bundleno = 1342 (0x53e), region = 96 }
 0x52b   : > { %1823 = vsyncadd [#allocation6], 1920  ;;  %s2936_s27 = smov [#allocation13]  }
 0x52c   : > { %s1829_s29 = sshll.u32 %s2936_s27, 4  ;;  %s1830_s29 = int_to_ptr.vmem [resolvable:$true] %s1829_s29 }
 0x52d   : > { %s2828_s25 = scalar_lea.vmem %s1830_s29, 128  ;;  %s2832_s26 = scalar_lea.vmem %s1830_s29, 4096 }
 0x52e   : > { %p2829_p5 = scmp.ne.s32.totalorder %s1830_s29, %s2828_s25  ;;  %p2833_p8 = scmp.lt.s32.totalorder %s1830_s29, %s1830_s29 }
 0x52f   : > { %p2834_p6 = scmp.lt.s32.totalorder %s2832_s26, %s2828_s25 }
 0x531   : > { %p2835_p0 = por %p2834_p6, %p2833_p8 }
 0x533   : > { %p2836_p3 = pnand %p2835_p0, %p2829_p5 }
 0x535   : > { %2839 = shalt.err (!%p2836_p3)
}
 0x536   : > { %s2840_s20 = scalar_lea.hbm %s3308_s9, 128 }
 0x537   : > { %p2841_p4 = scmp.ne.s32.totalorder %s3308_s9, %s2840_s20  ;;  %p2844_p9 = scmp.lt.u32.totalorder %s2840_s20, %s3308_s9 }
 0x539   : > { %p2846_p10 = pnand %p2844_p9, %p2841_p4 }
 0x53b   : > { %2849 = shalt.err (!%p2846_p10)
}
 0x53c   : > { %s2937_s19 = smov 128   ;;  %s2938_s3 = smov 8  }
 0x53d   : > { %1835 = dma.vmem_to_hbm [thread:$0]  %s1830_s29, 128, %s3308_s9, [#allocation6], %s2937_s19, %s2937_s19, %s2938_s3  }
 0x53e PF: > { %1838 = sbr.rel (%p2084_p2) target bundleno = 1368 (0x558), region = 100 }
 0x545   : > { %1844 = vsyncadd [#allocation15], 1920  ;;  %s2939_s12 = smov [#allocation14]  }
 0x546   : > { %s1849_s21 = sshll.u32 %s2939_s12, 4  ;;  %s1850_s21 = int_to_ptr.vmem [resolvable:$true] %s1849_s21 }
 0x547   : > { %s2850_s13 = scalar_lea.vmem %s1850_s21, 128  ;;  %s2854_s17 = scalar_lea.vmem %s1850_s21, 2048 }
 0x548   : > { %p2851_p11 = scmp.ne.s32.totalorder %s1850_s21, %s2850_s13  ;;  %p2855_p12 = scmp.lt.s32.totalorder %s1850_s21, %s1850_s21 }
 0x549   : > { %p2856_p13 = scmp.lt.s32.totalorder %s2854_s17, %s2850_s13 }
 0x54b   : > { %p2857_p1 = por %p2856_p13, %p2855_p12 }
 0x54d   : > { %p2858_p5 = pnand %p2857_p1, %p2851_p11 }
 0x54f   : > { %2861 = shalt.err (!%p2858_p5)
}
 0x550   : > { %s2862_s29 = scalar_lea.hbm %s3309_s10, 128 }
 0x551   : > { %p2863_p2 = scmp.ne.s32.totalorder %s3309_s10, %s2862_s29  ;;  %p2866_p8 = scmp.lt.u32.totalorder %s2862_s29, %s3309_s10 }
 0x553   : > { %p2868_p6 = pnand %p2866_p8, %p2863_p2 }
 0x555   : > { %2871 = shalt.err (!%p2868_p6)
}
 0x556   : > { %s2940_s22 = smov 128   ;;  %s2941_s0 = smov 8  }
 0x557   : > { %1855 = dma.vmem_to_hbm [thread:$0]  %s1850_s21, 128, %s3309_s10, [#allocation15], %s2940_s22, %s2940_s22, %s2941_s0  }
 0x558 PF: > { %p2357_p0 = scmp.eq.s32.totalorder %s3013_s16, 1 }
 0x55a   : > { %2905 = dma.done.wait (%p2357_p0), [#allocation15], 2048  }
 0x55b   : > { %2907 = vsyncadd (%p2357_p0), [#allocation15], 4294965248 }
 0x55c PF: > { %s3331_s19 = sadd.s32 4294967294, %s2922_s15  }
 0x55d   : > { %p2359_p3 = scmp.eq.s32.totalorder %s3331_s19, 1 }
 0x55f   : > { %p2345_p4 = pnand %p2359_p3, %p2026_p7 }
 0x561   : > { %2909 = dma.done.wait (!%p2345_p4), [#allocation6], 2048  }
 0x562   : > { %2911 = vsyncadd (!%p2345_p4), [#allocation6], 4294965248  ;;  %s32_s15 = sadd.s32 1, %s2922_s15   ;;  %s3332_s13 = smov %s2918_s14 }
 0x563   : > { %p29_p9 = scmp.ge.s32.totalorder %s32_s15, 4   ;;  %s3333_s14 = smov %s3335_s18 }
 0x565   :  { %31 = sbr.rel (!%p29_p9) target bundleno = 13 (0xd), region = 161 }
 0x56c   :  { %1874 = vsyncpa [#allocation5], 1 }
 0x56d   :  { %1876 = vsyncpa [#allocation5 + $0x1], 1 }
 0x56e   :  { %1877 = vsyncpa [#allocation8], 1 }
 0x56f   :  { %1879 = vsyncpa [#allocation8 + $0x1], 1 }
 0x570   :  { %1880 = vsyncpa [#allocation11], 1 }
 0x571   :  { %1881 = vsyncpa [#allocation6], 1 }
 0x572   :  { %1883 = vsyncpa [#allocation6 + $0x1], 1 }
 0x573   :  { %1884 = vsyncpa [#allocation15], 1 }

</bundles_post_ra>
